<compile_context>
chip_gen: v6e
topology: v6e:2x2x1
jax: 0.10.0
libtpu: 0.0.40
codegen_flags: <defaults>
</compile_context>

<pallas_src>
import math
import jax
import jax.numpy as jnp
from jax.experimental import pallas as pl
from jax.experimental.pallas import tpu as pltpu


def _round_up(x, m):
    return (x + m - 1) // m * m


# ---------------------------------------------------------------------------
# Fused forward kernel: input projection + 2 LSTM layers + FC head.
# ---------------------------------------------------------------------------
def char_rnn_fused_kernel(x_ref, wih1_ref, whh1_ref, b1_ref,
                          w2cat_ref, b2_ref, wfc_ref, bfc_ref,
                          h0_ref, c0_ref,
                          logits_ref, hT_ref, cT_ref,
                          gx_sc, y2_sc):
    _, Bp, H = h0_ref.shape                    # Bp = batch padded to 8
    TB = x_ref.shape[0]
    T = TB // Bp

    # ---- Hoisted layer-1 input projection: one big M = T*Bp matmul (MXU) ----
    gx_sc[...] = (jnp.dot(x_ref[...], wih1_ref[...],
                          preferred_element_type=jnp.float32)
                  + b1_ref[...])               # (T*Bp, 4H), f32

    def gate_act(pre):
        # Two full-block EUP passes over (Bp, 4H), then cheap lane slices
        # (PyTorch gate order i, f, g, o).
        sig = jax.nn.sigmoid(pre)
        tah = jnp.tanh(pre)
        return (sig[:, 0 * H:1 * H], sig[:, 1 * H:2 * H],
                tah[:, 2 * H:3 * H], sig[:, 3 * H:4 * H])

    def step(t, carry):
        h1, c1, h2, c2 = carry                 # h: (Bp, H) bf16, c: (Bp, H) f32
        row = pl.multiple_of(t * Bp, 8)        # aligned sublane start

        # Layer 1: only the recurrent term stays inside the sequential loop.
        pre1 = gx_sc[pl.ds(row, Bp), :] + jnp.dot(
            h1, whh1_ref[...], preferred_element_type=jnp.float32)  # (Bp, 4H)
        i1, f1, g1, o1 = gate_act(pre1)
        c1 = f1 * c1 + i1 * g1
        h1 = (o1 * jnp.tanh(c1)).astype(jnp.bfloat16)

        # Layer 2: single fused matmul over concat([h1, h2]) @ (2H, 4H).
        x2 = jnp.concatenate([h1, h2], axis=-1)                      # (Bp, 2H)
        pre2 = (jnp.dot(x2, w2cat_ref[...],
                        preferred_element_type=jnp.float32)
                + b2_ref[...])                                       # (Bp, 4H)
        i2, f2, g2, o2 = gate_act(pre2)
        c2 = f2 * c2 + i2 * g2
        h2 = (o2 * jnp.tanh(c2)).astype(jnp.bfloat16)

        y2_sc[pl.ds(row, Bp), :] = h2          # bf16, stays in VMEM, never HBM
        return h1, c1, h2, c2

    # TODO(synk): keep unroll=True only while T is small; use partial unroll
    # (e.g. unroll=8) when T grows to avoid vreg-pressure spills.
    h1, c1, h2, c2 = jax.lax.fori_loop(
        0, T, step,
        (h0_ref[0].astype(jnp.bfloat16), c0_ref[0],
         h0_ref[1].astype(jnp.bfloat16), c0_ref[1]),
        unroll=True)

    # Final states written once from the loop carries.
    hT_ref[0] = h1.astype(jnp.float32)
    hT_ref[1] = h2.astype(jnp.float32)
    cT_ref[0] = c1
    cT_ref[1] = c2

    # ---- Fused FC head: one (T*Bp, H) @ (H, V_pad) matmul, lane-dense store --
    logits_ref[...] = (jnp.dot(y2_sc[...], wfc_ref[...],
                               preferred_element_type=jnp.float32)
                       + bfc_ref[...])


# ---------------------------------------------------------------------------
# CharRNN: parameter setup + forward (glue in plain JAX, hot path in Pallas).
# ---------------------------------------------------------------------------
def init_char_rnn_params(key, n_chars, n_hidden, n_layers):
    params = {"lstm": [], "fc": {}}
    stdv = 1.0 / math.sqrt(n_hidden)
    for layer in range(n_layers):
        in_size = n_chars if layer == 0 else n_hidden
        key, k1, k2, k3, k4 = jax.random.split(key, 5)
        params["lstm"].append({
            "w_ih": jax.random.uniform(k1, (4 * n_hidden, in_size),
                                       jnp.float32, -stdv, stdv),
            "w_hh": jax.random.uniform(k2, (4 * n_hidden, n_hidden),
                                       jnp.float32, -stdv, stdv),
            "b_ih": jax.random.uniform(k3, (4 * n_hidden,),
                                       jnp.float32, -stdv, stdv),
            "b_hh": jax.random.uniform(k4, (4 * n_hidden,),
                                       jnp.float32, -stdv, stdv),
        })
    key, kf = jax.random.split(key)
    # Matches CharRNN.init_weights(): fc.weight ~ U(-1, 1), fc.bias = 0.
    params["fc"]["weight"] = jax.random.uniform(kf, (n_chars, n_hidden),
                                                jnp.float32, -1.0, 1.0)
    params["fc"]["bias"] = jnp.zeros((n_chars,), jnp.float32)
    return params


def char_rnn_forward(params, x, hc, n_hidden):
    """x: (B, T, V) batch_first one-hot; hc: ((L, B, H), (L, B, H))."""
    h0, c0 = hc
    B, T, In = x.shape
    H = n_hidden
    n_layers = h0.shape[0]
    assert n_layers == 2 and len(params["lstm"]) == 2, "fused kernel is 2-layer"
    l1, l2 = params["lstm"]

    B_pad = _round_up(B, 8)          # sublane alignment for per-step slices

    # Time-major flattening + batch padding: row = t*B_pad + b; padded rows
    # are zeros and never leak into the real outputs (sliced off below).
    x_tm = jnp.transpose(x, (1, 0, 2))                       # (T, B, In)
    x_tm = jnp.pad(x_tm, ((0, 0), (0, B_pad - B), (0, 0)))
    x_flat = x_tm.reshape(T * B_pad, In).astype(jnp.bfloat16)

    # Weights: pre-transposed, bf16 for the MXU (accumulation stays f32).
    wih1 = jnp.transpose(l1["w_ih"]).astype(jnp.bfloat16)    # (In, 4H)
    whh1 = jnp.transpose(l1["w_hh"]).astype(jnp.bfloat16)    # (H, 4H)
    b1 = (l1["b_ih"] + l1["b_hh"]).reshape(1, 4 * H).astype(jnp.float32)
    # Layer 2: fuse input + recurrent weights into one (2H, 4H) matrix.
    w2cat = jnp.concatenate(
        [jnp.transpose(l2["w_ih"]), jnp.transpose(l2["w_hh"])],
        axis=0).astype(jnp.bfloat16)                         # (2H, 4H)
    b2 = (l2["b_ih"] + l2["b_hh"]).reshape(1, 4 * H).astype(jnp.float32)

    # FC head: pad V to a multiple of 128 for a lane-dense logits store.
    wfc = jnp.transpose(params["fc"]["weight"])              # (H, V)
    V = wfc.shape[1]
    V_pad = _round_up(V, 128)
    wfc_p = jnp.pad(wfc, ((0, 0), (0, V_pad - V))).astype(jnp.bfloat16)
    bfc_p = jnp.pad(params["fc"]["bias"],
                    (0, V_pad - V)).reshape(1, V_pad).astype(jnp.float32)

    h0p = jnp.pad(h0.astype(jnp.float32), ((0, 0), (0, B_pad - B), (0, 0)))
    c0p = jnp.pad(c0.astype(jnp.float32), ((0, 0), (0, B_pad - B), (0, 0)))

    # Advisory cost estimate for XLA's scheduler around the custom call.
    flops = (2 * T * B_pad * In * 4 * H          # hoisted input projection
             + 2 * T * B_pad * H * 4 * H         # layer-1 recurrent
             + 2 * T * B_pad * 2 * H * 4 * H     # layer-2 fused
             + 2 * T * B_pad * H * V_pad)        # FC head
    transcendentals = T * B_pad * (2 * (2 * 4 * H) + 2 * H)
    bytes_accessed = (x_flat.size * 2
                      + 2 * (wih1.size + whh1.size + w2cat.size + wfc_p.size)
                      + 4 * (b1.size + b2.size + bfc_p.size)
                      + 4 * 2 * (h0p.size + c0p.size)
                      + 4 * T * B_pad * V_pad)
    cost = pl.CostEstimate(flops=flops, transcendentals=transcendentals,
                           bytes_accessed=bytes_accessed)

    def full(shape):
        ndim = len(shape)
        return pl.BlockSpec(shape, lambda i: (0,) * ndim)

    grid_spec = pltpu.PrefetchScalarGridSpec(
        num_scalar_prefetch=0,
        grid=(1,),  # single invocation: the time loop lives inside the kernel
        in_specs=[
            full(x_flat.shape), full(wih1.shape), full(whh1.shape),
            full(b1.shape), full(w2cat.shape), full(b2.shape),
            full(wfc_p.shape), full(bfc_p.shape),
            full(h0p.shape), full(c0p.shape),
        ],
        out_specs=(
            full((T * B_pad, V_pad)),
            full((n_layers, B_pad, H)),
            full((n_layers, B_pad, H)),
        ),
        # Everything (weights + activations) is VMEM-resident at this size.
        # When scaling (esp. v7x's 64 MiB physical VMEM): keep bf16 scratches,
        # re-derive vmem_limit_bytes, and tile gx over time chunks.
        scratch_shapes=[pltpu.VMEM((T * B_pad, 4 * H), jnp.float32),  # gates(x)
                        pltpu.VMEM((T * B_pad, H), jnp.bfloat16)],    # layer-2 h
    )

    logits_pad, hTp, cTp = pl.pallas_call(
        char_rnn_fused_kernel,
        grid_spec=grid_spec,
        out_shape=(jax.ShapeDtypeStruct((T * B_pad, V_pad), jnp.float32),
                   jax.ShapeDtypeStruct((n_layers, B_pad, H), jnp.float32),
                   jax.ShapeDtypeStruct((n_layers, B_pad, H), jnp.float32)),
        compiler_params=pltpu.CompilerParams(
            dimension_semantics=("arbitrary",),
            vmem_limit_bytes=32 * 1024 * 1024),
        cost_estimate=cost,
    )(x_flat, wih1, whh1, b1, w2cat, b2, wfc_p, bfc_p, h0p, c0p)

    # Kernel rows are time-major (t*B_pad + b); PyTorch's x.view(B*T, H)
    # ordering is batch-major (b*T + t).  Slice off batch/vocab padding and
    # reorder — T*B*V elements, negligible traffic.
    logits = (logits_pad.reshape(T, B_pad, V_pad)[:, :B, :V]
              .transpose(1, 0, 2).reshape(B * T, V))
    hT = hTp[:, :B, :]
    cT = cTp[:, :B, :]
    return logits, (hT, cT)


if __name__ == "__main__":
    # Small shapes consistent with the module's forward.
    tokens = [chr(ord("a") + i) for i in range(16)]   # vocab = 16
    n_chars = len(tokens)
    n_hidden = 32
    n_layers = 2
    batch = 2
    seq = 8

    key = jax.random.PRNGKey(0)
    pkey, xkey = jax.random.split(key)
    params = init_char_rnn_params(pkey, n_chars, n_hidden, n_layers)

    # Deterministic one-hot input (B, T, V), like one_hot_encode in the model.
    idx = jax.random.randint(xkey, (batch, seq), 0, n_chars)
    x = jax.nn.one_hot(idx, n_chars, dtype=jnp.float32)

    # init_hidden(batch): zeros of shape (n_layers, batch, n_hidden).
    h0 = jnp.zeros((n_layers, batch, n_hidden), jnp.float32)
    c0 = jnp.zeros((n_layers, batch, n_hidden), jnp.float32)

    logits, (h, c) = char_rnn_forward(params, x, (h0, c0), n_hidden)
    jax.block_until_ready((logits, h, c))

    assert logits.shape == (batch * seq, n_chars)
    assert h.shape == (n_layers, batch, n_hidden)
    assert c.shape == (n_layers, batch, n_hidden)
    assert bool(jnp.all(jnp.isfinite(logits)))
    print("KERNEL_OK")
</pallas_src>

<mosaic_0001>
module attributes {stable_mosaic.version = 11 : i64} {
  func.func @char_rnn_fused_kernel(%arg0: i32, %arg1: memref<64x16xbf16, #tpu.memory_space<vmem>>, %arg2: memref<16x128xbf16, #tpu.memory_space<vmem>>, %arg3: memref<32x128xbf16, #tpu.memory_space<vmem>>, %arg4: memref<1x128xf32, #tpu.memory_space<vmem>>, %arg5: memref<64x128xbf16, #tpu.memory_space<vmem>>, %arg6: memref<1x128xf32, #tpu.memory_space<vmem>>, %arg7: memref<32x128xbf16, #tpu.memory_space<vmem>>, %arg8: memref<1x128xf32, #tpu.memory_space<vmem>>, %arg9: memref<2x8x32xf32, #tpu.memory_space<vmem>>, %arg10: memref<2x8x32xf32, #tpu.memory_space<vmem>>, %arg11: memref<64x128xf32, #tpu.memory_space<vmem>>, %arg12: memref<2x8x32xf32, #tpu.memory_space<vmem>>, %arg13: memref<2x8x32xf32, #tpu.memory_space<vmem>>, %arg14: memref<64x128xf32, #tpu.memory_space<vmem>>, %arg15: memref<64x32xbf16, #tpu.memory_space<vmem>>) attributes {dimension_semantics = [#tpu.dimension_semantics<arbitrary>], iteration_bounds = array<i64: 1>, scalar_prefetch = 0 : i64, scratch_operands = 2 : i64, tpu.core_type = #tpu.core_type<tc>, window_params = [{pipeline_mode = #tpu.pipeline_mode<synchronous>, transform_indices = @transform_0, window_bounds = array<i64: 64, 16>}, {pipeline_mode = #tpu.pipeline_mode<synchronous>, transform_indices = @transform_1, window_bounds = array<i64: 16, 128>}, {pipeline_mode = #tpu.pipeline_mode<synchronous>, transform_indices = @transform_2, window_bounds = array<i64: 32, 128>}, {pipeline_mode = #tpu.pipeline_mode<synchronous>, transform_indices = @transform_3, window_bounds = array<i64: 1, 128>}, {pipeline_mode = #tpu.pipeline_mode<synchronous>, transform_indices = @transform_4, window_bounds = array<i64: 64, 128>}, {pipeline_mode = #tpu.pipeline_mode<synchronous>, transform_indices = @transform_5, window_bounds = array<i64: 1, 128>}, {pipeline_mode = #tpu.pipeline_mode<synchronous>, transform_indices = @transform_6, window_bounds = array<i64: 32, 128>}, {pipeline_mode = #tpu.pipeline_mode<synchronous>, transform_indices = @transform_7, window_bounds = array<i64: 1, 128>}, {pipeline_mode = #tpu.pipeline_mode<synchronous>, transform_indices = @transform_8, window_bounds = array<i64: 2, 8, 32>}, {pipeline_mode = #tpu.pipeline_mode<synchronous>, transform_indices = @transform_9, window_bounds = array<i64: 2, 8, 32>}, {pipeline_mode = #tpu.pipeline_mode<synchronous>, transform_indices = @transform_10, window_bounds = array<i64: 64, 128>}, {pipeline_mode = #tpu.pipeline_mode<synchronous>, transform_indices = @transform_11, window_bounds = array<i64: 2, 8, 32>}, {pipeline_mode = #tpu.pipeline_mode<synchronous>, transform_indices = @transform_12, window_bounds = array<i64: 2, 8, 32>}]} {
    %c0 = arith.constant 0 : index
    %c0_0 = arith.constant 0 : index
    %0 = vector.load %arg1[%c0, %c0_0] : memref<64x16xbf16, #tpu.memory_space<vmem>>, vector<64x16xbf16>
    %c0_1 = arith.constant 0 : index
    %c0_2 = arith.constant 0 : index
    %1 = vector.load %arg2[%c0_1, %c0_2] : memref<16x128xbf16, #tpu.memory_space<vmem>>, vector<16x128xbf16>
    %cst = arith.constant dense<0.000000e+00> : vector<64x128xf32>
    %2 = tpu.matmul %0, %1, %cst {dimension_numbers = #tpu.dot_dimension_numbers<[1], [0], [0], [1], [0, 0, 1, 1], [], []>} : vector<64x16xbf16>, vector<16x128xbf16>, vector<64x128xf32> -> vector<64x128xf32>
    %c0_3 = arith.constant 0 : index
    %c0_4 = arith.constant 0 : index
    %3 = vector.load %arg4[%c0_3, %c0_4] : memref<1x128xf32, #tpu.memory_space<vmem>>, vector<1x128xf32>
    %4 = vector.broadcast %3 : vector<1x128xf32> to vector<64x128xf32>
    %5 = arith.addf %2, %4 : vector<64x128xf32>
    %c0_5 = arith.constant 0 : index
    %c0_6 = arith.constant 0 : index
    %6 = vector.load %arg14[%c0_5, %c0_6] : memref<64x128xf32, #tpu.memory_space<vmem>>, vector<64x128xf32>
    tpu.vector_store %arg14[%c0_5, %c0_6], %5 {strides = array<i32>} : memref<64x128xf32, #tpu.memory_space<vmem>>, vector<64x128xf32>,
    %c0_7 = arith.constant 0 : index
    %c0_8 = arith.constant 0 : index
    %c0_9 = arith.constant 0 : index
    %7 = vector.load %arg9[%c0_7, %c0_8, %c0_9] : memref<2x8x32xf32, #tpu.memory_space<vmem>>, vector<1x8x32xf32>
    %8 = vector.shape_cast %7 : vector<1x8x32xf32> to vector<8x32xf32>
    %9 = arith.truncf %8 : vector<8x32xf32> to vector<8x32xbf16>
    %c0_10 = arith.constant 0 : index
    %c0_11 = arith.constant 0 : index
    %c0_12 = arith.constant 0 : index
    %10 = vector.load %arg10[%c0_10, %c0_11, %c0_12] : memref<2x8x32xf32, #tpu.memory_space<vmem>>, vector<1x8x32xf32>
    %11 = vector.shape_cast %10 : vector<1x8x32xf32> to vector<8x32xf32>
    %c1 = arith.constant 1 : index
    %c0_13 = arith.constant 0 : index
    %c0_14 = arith.constant 0 : index
    %12 = vector.load %arg9[%c1, %c0_13, %c0_14] : memref<2x8x32xf32, #tpu.memory_space<vmem>>, vector<1x8x32xf32>
    %13 = vector.shape_cast %12 : vector<1x8x32xf32> to vector<8x32xf32>
    %14 = arith.truncf %13 : vector<8x32xf32> to vector<8x32xbf16>
    %c1_15 = arith.constant 1 : index
    %c0_16 = arith.constant 0 : index
    %c0_17 = arith.constant 0 : index
    %15 = vector.load %arg10[%c1_15, %c0_16, %c0_17] : memref<2x8x32xf32, #tpu.memory_space<vmem>>, vector<1x8x32xf32>
    %16 = vector.shape_cast %15 : vector<1x8x32xf32> to vector<8x32xf32>
    %c0_i32 = arith.constant 0 : i32
    %c8_i32 = arith.constant 8 : i32
    %17 = arith.muli %c0_i32, %c8_i32 : i32
    %18 = tpu.assume_multiple %17, 8 : i32
    %19 = arith.index_cast %18 : i32 to index
    %c0_18 = arith.constant 0 : index
    %20 = vector.load %arg14[%19, %c0_18] : memref<64x128xf32, #tpu.memory_space<vmem>>, vector<8x128xf32>
    %c0_19 = arith.constant 0 : index
    %c0_20 = arith.constant 0 : index
    %21 = vector.load %arg3[%c0_19, %c0_20] : memref<32x128xbf16, #tpu.memory_space<vmem>>, vector<32x128xbf16>
    %cst_21 = arith.constant dense<0.000000e+00> : vector<8x128xf32>
    %22 = tpu.matmul %9, %21, %cst_21 {dimension_numbers = #tpu.dot_dimension_numbers<[1], [0], [0], [1], [0, 0, 1, 1], [], []>} : vector<8x32xbf16>, vector<32x128xbf16>, vector<8x128xf32> -> vector<8x128xf32>
    %23 = arith.addf %20, %22 : vector<8x128xf32>
    %24 = arith.negf %23 : vector<8x128xf32>
    %25 = math.exp %24 : vector<8x128xf32>
    %cst_22 = arith.constant 1.000000e+00 : f32
    %26 = vector.broadcast %cst_22 : f32 to vector<8x128xf32>
    %27 = arith.addf %26, %25 : vector<8x128xf32>
    %28 = arith.divf %26, %27 : vector<8x128xf32>
    %29 = math.tanh %23 : vector<8x128xf32>
    %30 = vector.extract_strided_slice %28 {offsets = [0, 0], sizes = [8, 32], strides = [1, 1]} : vector<8x128xf32> to vector<8x32xf32>
    %31 = vector.extract_strided_slice %28 {offsets = [0, 32], sizes = [8, 32], strides = [1, 1]} : vector<8x128xf32> to vector<8x32xf32>
    %32 = vector.extract_strided_slice %29 {offsets = [0, 64], sizes = [8, 32], strides = [1, 1]} : vector<8x128xf32> to vector<8x32xf32>
    %33 = vector.extract_strided_slice %28 {offsets = [0, 96], sizes = [8, 32], strides = [1, 1]} : vector<8x128xf32> to vector<8x32xf32>
    %34 = arith.mulf %31, %11 : vector<8x32xf32>
    %35 = arith.mulf %30, %32 : vector<8x32xf32>
    %36 = arith.addf %34, %35 : vector<8x32xf32>
    %37 = math.tanh %36 : vector<8x32xf32>
    %38 = arith.mulf %33, %37 : vector<8x32xf32>
    %39 = arith.truncf %38 : vector<8x32xf32> to vector<8x32xbf16>
    %40 = tpu.concatenate %39, %14 in 1 : vector<8x32xbf16>, vector<8x32xbf16> -> vector<8x64xbf16>
    %c0_23 = arith.constant 0 : index
    %c0_24 = arith.constant 0 : index
    %41 = vector.load %arg5[%c0_23, %c0_24] : memref<64x128xbf16, #tpu.memory_space<vmem>>, vector<64x128xbf16>
    %cst_25 = arith.constant dense<0.000000e+00> : vector<8x128xf32>
    %42 = tpu.matmul %40, %41, %cst_25 {dimension_numbers = #tpu.dot_dimension_numbers<[1], [0], [0], [1], [0, 0, 1, 1], [], []>} : vector<8x64xbf16>, vector<64x128xbf16>, vector<8x128xf32> -> vector<8x128xf32>
    %c0_26 = arith.constant 0 : index
    %c0_27 = arith.constant 0 : index
    %43 = vector.load %arg6[%c0_26, %c0_27] : memref<1x128xf32, #tpu.memory_space<vmem>>, vector<1x128xf32>
    %44 = vector.broadcast %43 : vector<1x128xf32> to vector<8x128xf32>
    %45 = arith.addf %42, %44 : vector<8x128xf32>
    %46 = arith.negf %45 : vector<8x128xf32>
    %47 = math.exp %46 : vector<8x128xf32>
    %cst_28 = arith.constant 1.000000e+00 : f32
    %48 = vector.broadcast %cst_28 : f32 to vector<8x128xf32>
    %49 = arith.addf %48, %47 : vector<8x128xf32>
    %50 = arith.divf %48, %49 : vector<8x128xf32>
    %51 = math.tanh %45 : vector<8x128xf32>
    %52 = vector.extract_strided_slice %50 {offsets = [0, 0], sizes = [8, 32], strides = [1, 1]} : vector<8x128xf32> to vector<8x32xf32>
    %53 = vector.extract_strided_slice %50 {offsets = [0, 32], sizes = [8, 32], strides = [1, 1]} : vector<8x128xf32> to vector<8x32xf32>
    %54 = vector.extract_strided_slice %51 {offsets = [0, 64], sizes = [8, 32], strides = [1, 1]} : vector<8x128xf32> to vector<8x32xf32>
    %55 = vector.extract_strided_slice %50 {offsets = [0, 96], sizes = [8, 32], strides = [1, 1]} : vector<8x128xf32> to vector<8x32xf32>
    %56 = arith.mulf %53, %16 : vector<8x32xf32>
    %57 = arith.mulf %52, %54 : vector<8x32xf32>
    %58 = arith.addf %56, %57 : vector<8x32xf32>
    %59 = math.tanh %58 : vector<8x32xf32>
    %60 = arith.mulf %55, %59 : vector<8x32xf32>
    %61 = arith.truncf %60 : vector<8x32xf32> to vector<8x32xbf16>
    %62 = arith.index_cast %18 : i32 to index
    %c0_29 = arith.constant 0 : index
    %63 = vector.load %arg15[%62, %c0_29] : memref<64x32xbf16, #tpu.memory_space<vmem>>, vector<8x32xbf16>
    tpu.vector_store %arg15[%62, %c0_29], %61 {strides = array<i32>} : memref<64x32xbf16, #tpu.memory_space<vmem>>, vector<8x32xbf16>,
    %c1_i32 = arith.constant 1 : i32
    %c8_i32_30 = arith.constant 8 : i32
    %64 = arith.muli %c1_i32, %c8_i32_30 : i32
    %65 = tpu.assume_multiple %64, 8 : i32
    %66 = arith.index_cast %65 : i32 to index
    %c0_31 = arith.constant 0 : index
    %67 = vector.load %arg14[%66, %c0_31] : memref<64x128xf32, #tpu.memory_space<vmem>>, vector<8x128xf32>
    %c0_32 = arith.constant 0 : index
    %c0_33 = arith.constant 0 : index
    %68 = vector.load %arg3[%c0_32, %c0_33] : memref<32x128xbf16, #tpu.memory_space<vmem>>, vector<32x128xbf16>
    %cst_34 = arith.constant dense<0.000000e+00> : vector<8x128xf32>
    %69 = tpu.matmul %39, %68, %cst_34 {dimension_numbers = #tpu.dot_dimension_numbers<[1], [0], [0], [1], [0, 0, 1, 1], [], []>} : vector<8x32xbf16>, vector<32x128xbf16>, vector<8x128xf32> -> vector<8x128xf32>
    %70 = arith.addf %67, %69 : vector<8x128xf32>
    %71 = arith.negf %70 : vector<8x128xf32>
    %72 = math.exp %71 : vector<8x128xf32>
    %cst_35 = arith.constant 1.000000e+00 : f32
    %73 = vector.broadcast %cst_35 : f32 to vector<8x128xf32>
    %74 = arith.addf %73, %72 : vector<8x128xf32>
    %75 = arith.divf %73, %74 : vector<8x128xf32>
    %76 = math.tanh %70 : vector<8x128xf32>
    %77 = vector.extract_strided_slice %75 {offsets = [0, 0], sizes = [8, 32], strides = [1, 1]} : vector<8x128xf32> to vector<8x32xf32>
    %78 = vector.extract_strided_slice %75 {offsets = [0, 32], sizes = [8, 32], strides = [1, 1]} : vector<8x128xf32> to vector<8x32xf32>
    %79 = vector.extract_strided_slice %76 {offsets = [0, 64], sizes = [8, 32], strides = [1, 1]} : vector<8x128xf32> to vector<8x32xf32>
    %80 = vector.extract_strided_slice %75 {offsets = [0, 96], sizes = [8, 32], strides = [1, 1]} : vector<8x128xf32> to vector<8x32xf32>
    %81 = arith.mulf %78, %36 : vector<8x32xf32>
    %82 = arith.mulf %77, %79 : vector<8x32xf32>
    %83 = arith.addf %81, %82 : vector<8x32xf32>
    %84 = math.tanh %83 : vector<8x32xf32>
    %85 = arith.mulf %80, %84 : vector<8x32xf32>
    %86 = arith.truncf %85 : vector<8x32xf32> to vector<8x32xbf16>
    %87 = tpu.concatenate %86, %61 in 1 : vector<8x32xbf16>, vector<8x32xbf16> -> vector<8x64xbf16>
    %c0_36 = arith.constant 0 : index
    %c0_37 = arith.constant 0 : index
    %88 = vector.load %arg5[%c0_36, %c0_37] : memref<64x128xbf16, #tpu.memory_space<vmem>>, vector<64x128xbf16>
    %cst_38 = arith.constant dense<0.000000e+00> : vector<8x128xf32>
    %89 = tpu.matmul %87, %88, %cst_38 {dimension_numbers = #tpu.dot_dimension_numbers<[1], [0], [0], [1], [0, 0, 1, 1], [], []>} : vector<8x64xbf16>, vector<64x128xbf16>, vector<8x128xf32> -> vector<8x128xf32>
    %c0_39 = arith.constant 0 : index
    %c0_40 = arith.constant 0 : index
    %90 = vector.load %arg6[%c0_39, %c0_40] : memref<1x128xf32, #tpu.memory_space<vmem>>, vector<1x128xf32>
    %91 = vector.broadcast %90 : vector<1x128xf32> to vector<8x128xf32>
    %92 = arith.addf %89, %91 : vector<8x128xf32>
    %93 = arith.negf %92 : vector<8x128xf32>
    %94 = math.exp %93 : vector<8x128xf32>
    %cst_41 = arith.constant 1.000000e+00 : f32
    %95 = vector.broadcast %cst_41 : f32 to vector<8x128xf32>
    %96 = arith.addf %95, %94 : vector<8x128xf32>
    %97 = arith.divf %95, %96 : vector<8x128xf32>
    %98 = math.tanh %92 : vector<8x128xf32>
    %99 = vector.extract_strided_slice %97 {offsets = [0, 0], sizes = [8, 32], strides = [1, 1]} : vector<8x128xf32> to vector<8x32xf32>
    %100 = vector.extract_strided_slice %97 {offsets = [0, 32], sizes = [8, 32], strides = [1, 1]} : vector<8x128xf32> to vector<8x32xf32>
    %101 = vector.extract_strided_slice %98 {offsets = [0, 64], sizes = [8, 32], strides = [1, 1]} : vector<8x128xf32> to vector<8x32xf32>
    %102 = vector.extract_strided_slice %97 {offsets = [0, 96], sizes = [8, 32], strides = [1, 1]} : vector<8x128xf32> to vector<8x32xf32>
    %103 = arith.mulf %100, %58 : vector<8x32xf32>
    %104 = arith.mulf %99, %101 : vector<8x32xf32>
    %105 = arith.addf %103, %104 : vector<8x32xf32>
    %106 = math.tanh %105 : vector<8x32xf32>
    %107 = arith.mulf %102, %106 : vector<8x32xf32>
    %108 = arith.truncf %107 : vector<8x32xf32> to vector<8x32xbf16>
    %109 = arith.index_cast %65 : i32 to index
    %c0_42 = arith.constant 0 : index
    %110 = vector.load %arg15[%109, %c0_42] : memref<64x32xbf16, #tpu.memory_space<vmem>>, vector<8x32xbf16>
    tpu.vector_store %arg15[%109, %c0_42], %108 {strides = array<i32>} : memref<64x32xbf16, #tpu.memory_space<vmem>>, vector<8x32xbf16>,
    %c2_i32 = arith.constant 2 : i32
    %c8_i32_43 = arith.constant 8 : i32
    %111 = arith.muli %c2_i32, %c8_i32_43 : i32
    %112 = tpu.assume_multiple %111, 8 : i32
    %113 = arith.index_cast %112 : i32 to index
    %c0_44 = arith.constant 0 : index
    %114 = vector.load %arg14[%113, %c0_44] : memref<64x128xf32, #tpu.memory_space<vmem>>, vector<8x128xf32>
    %c0_45 = arith.constant 0 : index
    %c0_46 = arith.constant 0 : index
    %115 = vector.load %arg3[%c0_45, %c0_46] : memref<32x128xbf16, #tpu.memory_space<vmem>>, vector<32x128xbf16>
    %cst_47 = arith.constant dense<0.000000e+00> : vector<8x128xf32>
    %116 = tpu.matmul %86, %115, %cst_47 {dimension_numbers = #tpu.dot_dimension_numbers<[1], [0], [0], [1], [0, 0, 1, 1], [], []>} : vector<8x32xbf16>, vector<32x128xbf16>, vector<8x128xf32> -> vector<8x128xf32>
    %117 = arith.addf %114, %116 : vector<8x128xf32>
    %118 = arith.negf %117 : vector<8x128xf32>
    %119 = math.exp %118 : vector<8x128xf32>
    %cst_48 = arith.constant 1.000000e+00 : f32
    %120 = vector.broadcast %cst_48 : f32 to vector<8x128xf32>
    %121 = arith.addf %120, %119 : vector<8x128xf32>
    %122 = arith.divf %120, %121 : vector<8x128xf32>
    %123 = math.tanh %117 : vector<8x128xf32>
    %124 = vector.extract_strided_slice %122 {offsets = [0, 0], sizes = [8, 32], strides = [1, 1]} : vector<8x128xf32> to vector<8x32xf32>
    %125 = vector.extract_strided_slice %122 {offsets = [0, 32], sizes = [8, 32], strides = [1, 1]} : vector<8x128xf32> to vector<8x32xf32>
    %126 = vector.extract_strided_slice %123 {offsets = [0, 64], sizes = [8, 32], strides = [1, 1]} : vector<8x128xf32> to vector<8x32xf32>
    %127 = vector.extract_strided_slice %122 {offsets = [0, 96], sizes = [8, 32], strides = [1, 1]} : vector<8x128xf32> to vector<8x32xf32>
    %128 = arith.mulf %125, %83 : vector<8x32xf32>
    %129 = arith.mulf %124, %126 : vector<8x32xf32>
    %130 = arith.addf %128, %129 : vector<8x32xf32>
    %131 = math.tanh %130 : vector<8x32xf32>
    %132 = arith.mulf %127, %131 : vector<8x32xf32>
    %133 = arith.truncf %132 : vector<8x32xf32> to vector<8x32xbf16>
    %134 = tpu.concatenate %133, %108 in 1 : vector<8x32xbf16>, vector<8x32xbf16> -> vector<8x64xbf16>
    %c0_49 = arith.constant 0 : index
    %c0_50 = arith.constant 0 : index
    %135 = vector.load %arg5[%c0_49, %c0_50] : memref<64x128xbf16, #tpu.memory_space<vmem>>, vector<64x128xbf16>
    %cst_51 = arith.constant dense<0.000000e+00> : vector<8x128xf32>
    %136 = tpu.matmul %134, %135, %cst_51 {dimension_numbers = #tpu.dot_dimension_numbers<[1], [0], [0], [1], [0, 0, 1, 1], [], []>} : vector<8x64xbf16>, vector<64x128xbf16>, vector<8x128xf32> -> vector<8x128xf32>
    %c0_52 = arith.constant 0 : index
    %c0_53 = arith.constant 0 : index
    %137 = vector.load %arg6[%c0_52, %c0_53] : memref<1x128xf32, #tpu.memory_space<vmem>>, vector<1x128xf32>
    %138 = vector.broadcast %137 : vector<1x128xf32> to vector<8x128xf32>
    %139 = arith.addf %136, %138 : vector<8x128xf32>
    %140 = arith.negf %139 : vector<8x128xf32>
    %141 = math.exp %140 : vector<8x128xf32>
    %cst_54 = arith.constant 1.000000e+00 : f32
    %142 = vector.broadcast %cst_54 : f32 to vector<8x128xf32>
    %143 = arith.addf %142, %141 : vector<8x128xf32>
    %144 = arith.divf %142, %143 : vector<8x128xf32>
    %145 = math.tanh %139 : vector<8x128xf32>
    %146 = vector.extract_strided_slice %144 {offsets = [0, 0], sizes = [8, 32], strides = [1, 1]} : vector<8x128xf32> to vector<8x32xf32>
    %147 = vector.extract_strided_slice %144 {offsets = [0, 32], sizes = [8, 32], strides = [1, 1]} : vector<8x128xf32> to vector<8x32xf32>
    %148 = vector.extract_strided_slice %145 {offsets = [0, 64], sizes = [8, 32], strides = [1, 1]} : vector<8x128xf32> to vector<8x32xf32>
    %149 = vector.extract_strided_slice %144 {offsets = [0, 96], sizes = [8, 32], strides = [1, 1]} : vector<8x128xf32> to vector<8x32xf32>
    %150 = arith.mulf %147, %105 : vector<8x32xf32>
    %151 = arith.mulf %146, %148 : vector<8x32xf32>
    %152 = arith.addf %150, %151 : vector<8x32xf32>
    %153 = math.tanh %152 : vector<8x32xf32>
    %154 = arith.mulf %149, %153 : vector<8x32xf32>
    %155 = arith.truncf %154 : vector<8x32xf32> to vector<8x32xbf16>
    %156 = arith.index_cast %112 : i32 to index
    %c0_55 = arith.constant 0 : index
    %157 = vector.load %arg15[%156, %c0_55] : memref<64x32xbf16, #tpu.memory_space<vmem>>, vector<8x32xbf16>
    tpu.vector_store %arg15[%156, %c0_55], %155 {strides = array<i32>} : memref<64x32xbf16, #tpu.memory_space<vmem>>, vector<8x32xbf16>,
    %c3_i32 = arith.constant 3 : i32
    %c8_i32_56 = arith.constant 8 : i32
    %158 = arith.muli %c3_i32, %c8_i32_56 : i32
    %159 = tpu.assume_multiple %158, 8 : i32
    %160 = arith.index_cast %159 : i32 to index
    %c0_57 = arith.constant 0 : index
    %161 = vector.load %arg14[%160, %c0_57] : memref<64x128xf32, #tpu.memory_space<vmem>>, vector<8x128xf32>
    %c0_58 = arith.constant 0 : index
    %c0_59 = arith.constant 0 : index
    %162 = vector.load %arg3[%c0_58, %c0_59] : memref<32x128xbf16, #tpu.memory_space<vmem>>, vector<32x128xbf16>
    %cst_60 = arith.constant dense<0.000000e+00> : vector<8x128xf32>
    %163 = tpu.matmul %133, %162, %cst_60 {dimension_numbers = #tpu.dot_dimension_numbers<[1], [0], [0], [1], [0, 0, 1, 1], [], []>} : vector<8x32xbf16>, vector<32x128xbf16>, vector<8x128xf32> -> vector<8x128xf32>
    %164 = arith.addf %161, %163 : vector<8x128xf32>
    %165 = arith.negf %164 : vector<8x128xf32>
    %166 = math.exp %165 : vector<8x128xf32>
    %cst_61 = arith.constant 1.000000e+00 : f32
    %167 = vector.broadcast %cst_61 : f32 to vector<8x128xf32>
    %168 = arith.addf %167, %166 : vector<8x128xf32>
    %169 = arith.divf %167, %168 : vector<8x128xf32>
    %170 = math.tanh %164 : vector<8x128xf32>
    %171 = vector.extract_strided_slice %169 {offsets = [0, 0], sizes = [8, 32], strides = [1, 1]} : vector<8x128xf32> to vector<8x32xf32>
    %172 = vector.extract_strided_slice %169 {offsets = [0, 32], sizes = [8, 32], strides = [1, 1]} : vector<8x128xf32> to vector<8x32xf32>
    %173 = vector.extract_strided_slice %170 {offsets = [0, 64], sizes = [8, 32], strides = [1, 1]} : vector<8x128xf32> to vector<8x32xf32>
    %174 = vector.extract_strided_slice %169 {offsets = [0, 96], sizes = [8, 32], strides = [1, 1]} : vector<8x128xf32> to vector<8x32xf32>
    %175 = arith.mulf %172, %130 : vector<8x32xf32>
    %176 = arith.mulf %171, %173 : vector<8x32xf32>
    %177 = arith.addf %175, %176 : vector<8x32xf32>
    %178 = math.tanh %177 : vector<8x32xf32>
    %179 = arith.mulf %174, %178 : vector<8x32xf32>
    %180 = arith.truncf %179 : vector<8x32xf32> to vector<8x32xbf16>
    %181 = tpu.concatenate %180, %155 in 1 : vector<8x32xbf16>, vector<8x32xbf16> -> vector<8x64xbf16>
    %c0_62 = arith.constant 0 : index
    %c0_63 = arith.constant 0 : index
    %182 = vector.load %arg5[%c0_62, %c0_63] : memref<64x128xbf16, #tpu.memory_space<vmem>>, vector<64x128xbf16>
    %cst_64 = arith.constant dense<0.000000e+00> : vector<8x128xf32>
    %183 = tpu.matmul %181, %182, %cst_64 {dimension_numbers = #tpu.dot_dimension_numbers<[1], [0], [0], [1], [0, 0, 1, 1], [], []>} : vector<8x64xbf16>, vector<64x128xbf16>, vector<8x128xf32> -> vector<8x128xf32>
    %c0_65 = arith.constant 0 : index
    %c0_66 = arith.constant 0 : index
    %184 = vector.load %arg6[%c0_65, %c0_66] : memref<1x128xf32, #tpu.memory_space<vmem>>, vector<1x128xf32>
    %185 = vector.broadcast %184 : vector<1x128xf32> to vector<8x128xf32>
    %186 = arith.addf %183, %185 : vector<8x128xf32>
    %187 = arith.negf %186 : vector<8x128xf32>
    %188 = math.exp %187 : vector<8x128xf32>
    %cst_67 = arith.constant 1.000000e+00 : f32
    %189 = vector.broadcast %cst_67 : f32 to vector<8x128xf32>
    %190 = arith.addf %189, %188 : vector<8x128xf32>
    %191 = arith.divf %189, %190 : vector<8x128xf32>
    %192 = math.tanh %186 : vector<8x128xf32>
    %193 = vector.extract_strided_slice %191 {offsets = [0, 0], sizes = [8, 32], strides = [1, 1]} : vector<8x128xf32> to vector<8x32xf32>
    %194 = vector.extract_strided_slice %191 {offsets = [0, 32], sizes = [8, 32], strides = [1, 1]} : vector<8x128xf32> to vector<8x32xf32>
    %195 = vector.extract_strided_slice %192 {offsets = [0, 64], sizes = [8, 32], strides = [1, 1]} : vector<8x128xf32> to vector<8x32xf32>
    %196 = vector.extract_strided_slice %191 {offsets = [0, 96], sizes = [8, 32], strides = [1, 1]} : vector<8x128xf32> to vector<8x32xf32>
    %197 = arith.mulf %194, %152 : vector<8x32xf32>
    %198 = arith.mulf %193, %195 : vector<8x32xf32>
    %199 = arith.addf %197, %198 : vector<8x32xf32>
    %200 = math.tanh %199 : vector<8x32xf32>
    %201 = arith.mulf %196, %200 : vector<8x32xf32>
    %202 = arith.truncf %201 : vector<8x32xf32> to vector<8x32xbf16>
    %203 = arith.index_cast %159 : i32 to index
    %c0_68 = arith.constant 0 : index
    %204 = vector.load %arg15[%203, %c0_68] : memref<64x32xbf16, #tpu.memory_space<vmem>>, vector<8x32xbf16>
    tpu.vector_store %arg15[%203, %c0_68], %202 {strides = array<i32>} : memref<64x32xbf16, #tpu.memory_space<vmem>>, vector<8x32xbf16>,
    %c4_i32 = arith.constant 4 : i32
    %c8_i32_69 = arith.constant 8 : i32
    %205 = arith.muli %c4_i32, %c8_i32_69 : i32
    %206 = tpu.assume_multiple %205, 8 : i32
    %207 = arith.index_cast %206 : i32 to index
    %c0_70 = arith.constant 0 : index
    %208 = vector.load %arg14[%207, %c0_70] : memref<64x128xf32, #tpu.memory_space<vmem>>, vector<8x128xf32>
    %c0_71 = arith.constant 0 : index
    %c0_72 = arith.constant 0 : index
    %209 = vector.load %arg3[%c0_71, %c0_72] : memref<32x128xbf16, #tpu.memory_space<vmem>>, vector<32x128xbf16>
    %cst_73 = arith.constant dense<0.000000e+00> : vector<8x128xf32>
    %210 = tpu.matmul %180, %209, %cst_73 {dimension_numbers = #tpu.dot_dimension_numbers<[1], [0], [0], [1], [0, 0, 1, 1], [], []>} : vector<8x32xbf16>, vector<32x128xbf16>, vector<8x128xf32> -> vector<8x128xf32>
    %211 = arith.addf %208, %210 : vector<8x128xf32>
    %212 = arith.negf %211 : vector<8x128xf32>
    %213 = math.exp %212 : vector<8x128xf32>
    %cst_74 = arith.constant 1.000000e+00 : f32
    %214 = vector.broadcast %cst_74 : f32 to vector<8x128xf32>
    %215 = arith.addf %214, %213 : vector<8x128xf32>
    %216 = arith.divf %214, %215 : vector<8x128xf32>
    %217 = math.tanh %211 : vector<8x128xf32>
    %218 = vector.extract_strided_slice %216 {offsets = [0, 0], sizes = [8, 32], strides = [1, 1]} : vector<8x128xf32> to vector<8x32xf32>
    %219 = vector.extract_strided_slice %216 {offsets = [0, 32], sizes = [8, 32], strides = [1, 1]} : vector<8x128xf32> to vector<8x32xf32>
    %220 = vector.extract_strided_slice %217 {offsets = [0, 64], sizes = [8, 32], strides = [1, 1]} : vector<8x128xf32> to vector<8x32xf32>
    %221 = vector.extract_strided_slice %216 {offsets = [0, 96], sizes = [8, 32], strides = [1, 1]} : vector<8x128xf32> to vector<8x32xf32>
    %222 = arith.mulf %219, %177 : vector<8x32xf32>
    %223 = arith.mulf %218, %220 : vector<8x32xf32>
    %224 = arith.addf %222, %223 : vector<8x32xf32>
    %225 = math.tanh %224 : vector<8x32xf32>
    %226 = arith.mulf %221, %225 : vector<8x32xf32>
    %227 = arith.truncf %226 : vector<8x32xf32> to vector<8x32xbf16>
    %228 = tpu.concatenate %227, %202 in 1 : vector<8x32xbf16>, vector<8x32xbf16> -> vector<8x64xbf16>
    %c0_75 = arith.constant 0 : index
    %c0_76 = arith.constant 0 : index
    %229 = vector.load %arg5[%c0_75, %c0_76] : memref<64x128xbf16, #tpu.memory_space<vmem>>, vector<64x128xbf16>
    %cst_77 = arith.constant dense<0.000000e+00> : vector<8x128xf32>
    %230 = tpu.matmul %228, %229, %cst_77 {dimension_numbers = #tpu.dot_dimension_numbers<[1], [0], [0], [1], [0, 0, 1, 1], [], []>} : vector<8x64xbf16>, vector<64x128xbf16>, vector<8x128xf32> -> vector<8x128xf32>
    %c0_78 = arith.constant 0 : index
    %c0_79 = arith.constant 0 : index
    %231 = vector.load %arg6[%c0_78, %c0_79] : memref<1x128xf32, #tpu.memory_space<vmem>>, vector<1x128xf32>
    %232 = vector.broadcast %231 : vector<1x128xf32> to vector<8x128xf32>
    %233 = arith.addf %230, %232 : vector<8x128xf32>
    %234 = arith.negf %233 : vector<8x128xf32>
    %235 = math.exp %234 : vector<8x128xf32>
    %cst_80 = arith.constant 1.000000e+00 : f32
    %236 = vector.broadcast %cst_80 : f32 to vector<8x128xf32>
    %237 = arith.addf %236, %235 : vector<8x128xf32>
    %238 = arith.divf %236, %237 : vector<8x128xf32>
    %239 = math.tanh %233 : vector<8x128xf32>
    %240 = vector.extract_strided_slice %238 {offsets = [0, 0], sizes = [8, 32], strides = [1, 1]} : vector<8x128xf32> to vector<8x32xf32>
    %241 = vector.extract_strided_slice %238 {offsets = [0, 32], sizes = [8, 32], strides = [1, 1]} : vector<8x128xf32> to vector<8x32xf32>
    %242 = vector.extract_strided_slice %239 {offsets = [0, 64], sizes = [8, 32], strides = [1, 1]} : vector<8x128xf32> to vector<8x32xf32>
    %243 = vector.extract_strided_slice %238 {offsets = [0, 96], sizes = [8, 32], strides = [1, 1]} : vector<8x128xf32> to vector<8x32xf32>
    %244 = arith.mulf %241, %199 : vector<8x32xf32>
    %245 = arith.mulf %240, %242 : vector<8x32xf32>
    %246 = arith.addf %244, %245 : vector<8x32xf32>
    %247 = math.tanh %246 : vector<8x32xf32>
    %248 = arith.mulf %243, %247 : vector<8x32xf32>
    %249 = arith.truncf %248 : vector<8x32xf32> to vector<8x32xbf16>
    %250 = arith.index_cast %206 : i32 to index
    %c0_81 = arith.constant 0 : index
    %251 = vector.load %arg15[%250, %c0_81] : memref<64x32xbf16, #tpu.memory_space<vmem>>, vector<8x32xbf16>
    tpu.vector_store %arg15[%250, %c0_81], %249 {strides = array<i32>} : memref<64x32xbf16, #tpu.memory_space<vmem>>, vector<8x32xbf16>,
    %c5_i32 = arith.constant 5 : i32
    %c8_i32_82 = arith.constant 8 : i32
    %252 = arith.muli %c5_i32, %c8_i32_82 : i32
    %253 = tpu.assume_multiple %252, 8 : i32
    %254 = arith.index_cast %253 : i32 to index
    %c0_83 = arith.constant 0 : index
    %255 = vector.load %arg14[%254, %c0_83] : memref<64x128xf32, #tpu.memory_space<vmem>>, vector<8x128xf32>
    %c0_84 = arith.constant 0 : index
    %c0_85 = arith.constant 0 : index
    %256 = vector.load %arg3[%c0_84, %c0_85] : memref<32x128xbf16, #tpu.memory_space<vmem>>, vector<32x128xbf16>
    %cst_86 = arith.constant dense<0.000000e+00> : vector<8x128xf32>
    %257 = tpu.matmul %227, %256, %cst_86 {dimension_numbers = #tpu.dot_dimension_numbers<[1], [0], [0], [1], [0, 0, 1, 1], [], []>} : vector<8x32xbf16>, vector<32x128xbf16>, vector<8x128xf32> -> vector<8x128xf32>
    %258 = arith.addf %255, %257 : vector<8x128xf32>
    %259 = arith.negf %258 : vector<8x128xf32>
    %260 = math.exp %259 : vector<8x128xf32>
    %cst_87 = arith.constant 1.000000e+00 : f32
    %261 = vector.broadcast %cst_87 : f32 to vector<8x128xf32>
    %262 = arith.addf %261, %260 : vector<8x128xf32>
    %263 = arith.divf %261, %262 : vector<8x128xf32>
    %264 = math.tanh %258 : vector<8x128xf32>
    %265 = vector.extract_strided_slice %263 {offsets = [0, 0], sizes = [8, 32], strides = [1, 1]} : vector<8x128xf32> to vector<8x32xf32>
    %266 = vector.extract_strided_slice %263 {offsets = [0, 32], sizes = [8, 32], strides = [1, 1]} : vector<8x128xf32> to vector<8x32xf32>
    %267 = vector.extract_strided_slice %264 {offsets = [0, 64], sizes = [8, 32], strides = [1, 1]} : vector<8x128xf32> to vector<8x32xf32>
    %268 = vector.extract_strided_slice %263 {offsets = [0, 96], sizes = [8, 32], strides = [1, 1]} : vector<8x128xf32> to vector<8x32xf32>
    %269 = arith.mulf %266, %224 : vector<8x32xf32>
    %270 = arith.mulf %265, %267 : vector<8x32xf32>
    %271 = arith.addf %269, %270 : vector<8x32xf32>
    %272 = math.tanh %271 : vector<8x32xf32>
    %273 = arith.mulf %268, %272 : vector<8x32xf32>
    %274 = arith.truncf %273 : vector<8x32xf32> to vector<8x32xbf16>
    %275 = tpu.concatenate %274, %249 in 1 : vector<8x32xbf16>, vector<8x32xbf16> -> vector<8x64xbf16>
    %c0_88 = arith.constant 0 : index
    %c0_89 = arith.constant 0 : index
    %276 = vector.load %arg5[%c0_88, %c0_89] : memref<64x128xbf16, #tpu.memory_space<vmem>>, vector<64x128xbf16>
    %cst_90 = arith.constant dense<0.000000e+00> : vector<8x128xf32>
    %277 = tpu.matmul %275, %276, %cst_90 {dimension_numbers = #tpu.dot_dimension_numbers<[1], [0], [0], [1], [0, 0, 1, 1], [], []>} : vector<8x64xbf16>, vector<64x128xbf16>, vector<8x128xf32> -> vector<8x128xf32>
    %c0_91 = arith.constant 0 : index
    %c0_92 = arith.constant 0 : index
    %278 = vector.load %arg6[%c0_91, %c0_92] : memref<1x128xf32, #tpu.memory_space<vmem>>, vector<1x128xf32>
    %279 = vector.broadcast %278 : vector<1x128xf32> to vector<8x128xf32>
    %280 = arith.addf %277, %279 : vector<8x128xf32>
    %281 = arith.negf %280 : vector<8x128xf32>
    %282 = math.exp %281 : vector<8x128xf32>
    %cst_93 = arith.constant 1.000000e+00 : f32
    %283 = vector.broadcast %cst_93 : f32 to vector<8x128xf32>
    %284 = arith.addf %283, %282 : vector<8x128xf32>
    %285 = arith.divf %283, %284 : vector<8x128xf32>
    %286 = math.tanh %280 : vector<8x128xf32>
    %287 = vector.extract_strided_slice %285 {offsets = [0, 0], sizes = [8, 32], strides = [1, 1]} : vector<8x128xf32> to vector<8x32xf32>
    %288 = vector.extract_strided_slice %285 {offsets = [0, 32], sizes = [8, 32], strides = [1, 1]} : vector<8x128xf32> to vector<8x32xf32>
    %289 = vector.extract_strided_slice %286 {offsets = [0, 64], sizes = [8, 32], strides = [1, 1]} : vector<8x128xf32> to vector<8x32xf32>
    %290 = vector.extract_strided_slice %285 {offsets = [0, 96], sizes = [8, 32], strides = [1, 1]} : vector<8x128xf32> to vector<8x32xf32>
    %291 = arith.mulf %288, %246 : vector<8x32xf32>
    %292 = arith.mulf %287, %289 : vector<8x32xf32>
    %293 = arith.addf %291, %292 : vector<8x32xf32>
    %294 = math.tanh %293 : vector<8x32xf32>
    %295 = arith.mulf %290, %294 : vector<8x32xf32>
    %296 = arith.truncf %295 : vector<8x32xf32> to vector<8x32xbf16>
    %297 = arith.index_cast %253 : i32 to index
    %c0_94 = arith.constant 0 : index
    %298 = vector.load %arg15[%297, %c0_94] : memref<64x32xbf16, #tpu.memory_space<vmem>>, vector<8x32xbf16>
    tpu.vector_store %arg15[%297, %c0_94], %296 {strides = array<i32>} : memref<64x32xbf16, #tpu.memory_space<vmem>>, vector<8x32xbf16>,
    %c6_i32 = arith.constant 6 : i32
    %c8_i32_95 = arith.constant 8 : i32
    %299 = arith.muli %c6_i32, %c8_i32_95 : i32
    %300 = tpu.assume_multiple %299, 8 : i32
    %301 = arith.index_cast %300 : i32 to index
    %c0_96 = arith.constant 0 : index
    %302 = vector.load %arg14[%301, %c0_96] : memref<64x128xf32, #tpu.memory_space<vmem>>, vector<8x128xf32>
    %c0_97 = arith.constant 0 : index
    %c0_98 = arith.constant 0 : index
    %303 = vector.load %arg3[%c0_97, %c0_98] : memref<32x128xbf16, #tpu.memory_space<vmem>>, vector<32x128xbf16>
    %cst_99 = arith.constant dense<0.000000e+00> : vector<8x128xf32>
    %304 = tpu.matmul %274, %303, %cst_99 {dimension_numbers = #tpu.dot_dimension_numbers<[1], [0], [0], [1], [0, 0, 1, 1], [], []>} : vector<8x32xbf16>, vector<32x128xbf16>, vector<8x128xf32> -> vector<8x128xf32>
    %305 = arith.addf %302, %304 : vector<8x128xf32>
    %306 = arith.negf %305 : vector<8x128xf32>
    %307 = math.exp %306 : vector<8x128xf32>
    %cst_100 = arith.constant 1.000000e+00 : f32
    %308 = vector.broadcast %cst_100 : f32 to vector<8x128xf32>
    %309 = arith.addf %308, %307 : vector<8x128xf32>
    %310 = arith.divf %308, %309 : vector<8x128xf32>
    %311 = math.tanh %305 : vector<8x128xf32>
    %312 = vector.extract_strided_slice %310 {offsets = [0, 0], sizes = [8, 32], strides = [1, 1]} : vector<8x128xf32> to vector<8x32xf32>
    %313 = vector.extract_strided_slice %310 {offsets = [0, 32], sizes = [8, 32], strides = [1, 1]} : vector<8x128xf32> to vector<8x32xf32>
    %314 = vector.extract_strided_slice %311 {offsets = [0, 64], sizes = [8, 32], strides = [1, 1]} : vector<8x128xf32> to vector<8x32xf32>
    %315 = vector.extract_strided_slice %310 {offsets = [0, 96], sizes = [8, 32], strides = [1, 1]} : vector<8x128xf32> to vector<8x32xf32>
    %316 = arith.mulf %313, %271 : vector<8x32xf32>
    %317 = arith.mulf %312, %314 : vector<8x32xf32>
    %318 = arith.addf %316, %317 : vector<8x32xf32>
    %319 = math.tanh %318 : vector<8x32xf32>
    %320 = arith.mulf %315, %319 : vector<8x32xf32>
    %321 = arith.truncf %320 : vector<8x32xf32> to vector<8x32xbf16>
    %322 = tpu.concatenate %321, %296 in 1 : vector<8x32xbf16>, vector<8x32xbf16> -> vector<8x64xbf16>
    %c0_101 = arith.constant 0 : index
    %c0_102 = arith.constant 0 : index
    %323 = vector.load %arg5[%c0_101, %c0_102] : memref<64x128xbf16, #tpu.memory_space<vmem>>, vector<64x128xbf16>
    %cst_103 = arith.constant dense<0.000000e+00> : vector<8x128xf32>
    %324 = tpu.matmul %322, %323, %cst_103 {dimension_numbers = #tpu.dot_dimension_numbers<[1], [0], [0], [1], [0, 0, 1, 1], [], []>} : vector<8x64xbf16>, vector<64x128xbf16>, vector<8x128xf32> -> vector<8x128xf32>
    %c0_104 = arith.constant 0 : index
    %c0_105 = arith.constant 0 : index
    %325 = vector.load %arg6[%c0_104, %c0_105] : memref<1x128xf32, #tpu.memory_space<vmem>>, vector<1x128xf32>
    %326 = vector.broadcast %325 : vector<1x128xf32> to vector<8x128xf32>
    %327 = arith.addf %324, %326 : vector<8x128xf32>
    %328 = arith.negf %327 : vector<8x128xf32>
    %329 = math.exp %328 : vector<8x128xf32>
    %cst_106 = arith.constant 1.000000e+00 : f32
    %330 = vector.broadcast %cst_106 : f32 to vector<8x128xf32>
    %331 = arith.addf %330, %329 : vector<8x128xf32>
    %332 = arith.divf %330, %331 : vector<8x128xf32>
    %333 = math.tanh %327 : vector<8x128xf32>
    %334 = vector.extract_strided_slice %332 {offsets = [0, 0], sizes = [8, 32], strides = [1, 1]} : vector<8x128xf32> to vector<8x32xf32>
    %335 = vector.extract_strided_slice %332 {offsets = [0, 32], sizes = [8, 32], strides = [1, 1]} : vector<8x128xf32> to vector<8x32xf32>
    %336 = vector.extract_strided_slice %333 {offsets = [0, 64], sizes = [8, 32], strides = [1, 1]} : vector<8x128xf32> to vector<8x32xf32>
    %337 = vector.extract_strided_slice %332 {offsets = [0, 96], sizes = [8, 32], strides = [1, 1]} : vector<8x128xf32> to vector<8x32xf32>
    %338 = arith.mulf %335, %293 : vector<8x32xf32>
    %339 = arith.mulf %334, %336 : vector<8x32xf32>
    %340 = arith.addf %338, %339 : vector<8x32xf32>
    %341 = math.tanh %340 : vector<8x32xf32>
    %342 = arith.mulf %337, %341 : vector<8x32xf32>
    %343 = arith.truncf %342 : vector<8x32xf32> to vector<8x32xbf16>
    %344 = arith.index_cast %300 : i32 to index
    %c0_107 = arith.constant 0 : index
    %345 = vector.load %arg15[%344, %c0_107] : memref<64x32xbf16, #tpu.memory_space<vmem>>, vector<8x32xbf16>
    tpu.vector_store %arg15[%344, %c0_107], %343 {strides = array<i32>} : memref<64x32xbf16, #tpu.memory_space<vmem>>, vector<8x32xbf16>,
    %c7_i32 = arith.constant 7 : i32
    %c8_i32_108 = arith.constant 8 : i32
    %346 = arith.muli %c7_i32, %c8_i32_108 : i32
    %347 = tpu.assume_multiple %346, 8 : i32
    %348 = arith.index_cast %347 : i32 to index
    %c0_109 = arith.constant 0 : index
    %349 = vector.load %arg14[%348, %c0_109] : memref<64x128xf32, #tpu.memory_space<vmem>>, vector<8x128xf32>
    %c0_110 = arith.constant 0 : index
    %c0_111 = arith.constant 0 : index
    %350 = vector.load %arg3[%c0_110, %c0_111] : memref<32x128xbf16, #tpu.memory_space<vmem>>, vector<32x128xbf16>
    %cst_112 = arith.constant dense<0.000000e+00> : vector<8x128xf32>
    %351 = tpu.matmul %321, %350, %cst_112 {dimension_numbers = #tpu.dot_dimension_numbers<[1], [0], [0], [1], [0, 0, 1, 1], [], []>} : vector<8x32xbf16>, vector<32x128xbf16>, vector<8x128xf32> -> vector<8x128xf32>
    %352 = arith.addf %349, %351 : vector<8x128xf32>
    %353 = arith.negf %352 : vector<8x128xf32>
    %354 = math.exp %353 : vector<8x128xf32>
    %cst_113 = arith.constant 1.000000e+00 : f32
    %355 = vector.broadcast %cst_113 : f32 to vector<8x128xf32>
    %356 = arith.addf %355, %354 : vector<8x128xf32>
    %357 = arith.divf %355, %356 : vector<8x128xf32>
    %358 = math.tanh %352 : vector<8x128xf32>
    %359 = vector.extract_strided_slice %357 {offsets = [0, 0], sizes = [8, 32], strides = [1, 1]} : vector<8x128xf32> to vector<8x32xf32>
    %360 = vector.extract_strided_slice %357 {offsets = [0, 32], sizes = [8, 32], strides = [1, 1]} : vector<8x128xf32> to vector<8x32xf32>
    %361 = vector.extract_strided_slice %358 {offsets = [0, 64], sizes = [8, 32], strides = [1, 1]} : vector<8x128xf32> to vector<8x32xf32>
    %362 = vector.extract_strided_slice %357 {offsets = [0, 96], sizes = [8, 32], strides = [1, 1]} : vector<8x128xf32> to vector<8x32xf32>
    %363 = arith.mulf %360, %318 : vector<8x32xf32>
    %364 = arith.mulf %359, %361 : vector<8x32xf32>
    %365 = arith.addf %363, %364 : vector<8x32xf32>
    %366 = math.tanh %365 : vector<8x32xf32>
    %367 = arith.mulf %362, %366 : vector<8x32xf32>
    %368 = arith.truncf %367 : vector<8x32xf32> to vector<8x32xbf16>
    %369 = tpu.concatenate %368, %343 in 1 : vector<8x32xbf16>, vector<8x32xbf16> -> vector<8x64xbf16>
    %c0_114 = arith.constant 0 : index
    %c0_115 = arith.constant 0 : index
    %370 = vector.load %arg5[%c0_114, %c0_115] : memref<64x128xbf16, #tpu.memory_space<vmem>>, vector<64x128xbf16>
    %cst_116 = arith.constant dense<0.000000e+00> : vector<8x128xf32>
    %371 = tpu.matmul %369, %370, %cst_116 {dimension_numbers = #tpu.dot_dimension_numbers<[1], [0], [0], [1], [0, 0, 1, 1], [], []>} : vector<8x64xbf16>, vector<64x128xbf16>, vector<8x128xf32> -> vector<8x128xf32>
    %c0_117 = arith.constant 0 : index
    %c0_118 = arith.constant 0 : index
    %372 = vector.load %arg6[%c0_117, %c0_118] : memref<1x128xf32, #tpu.memory_space<vmem>>, vector<1x128xf32>
    %373 = vector.broadcast %372 : vector<1x128xf32> to vector<8x128xf32>
    %374 = arith.addf %371, %373 : vector<8x128xf32>
    %375 = arith.negf %374 : vector<8x128xf32>
    %376 = math.exp %375 : vector<8x128xf32>
    %cst_119 = arith.constant 1.000000e+00 : f32
    %377 = vector.broadcast %cst_119 : f32 to vector<8x128xf32>
    %378 = arith.addf %377, %376 : vector<8x128xf32>
    %379 = arith.divf %377, %378 : vector<8x128xf32>
    %380 = math.tanh %374 : vector<8x128xf32>
    %381 = vector.extract_strided_slice %379 {offsets = [0, 0], sizes = [8, 32], strides = [1, 1]} : vector<8x128xf32> to vector<8x32xf32>
    %382 = vector.extract_strided_slice %379 {offsets = [0, 32], sizes = [8, 32], strides = [1, 1]} : vector<8x128xf32> to vector<8x32xf32>
    %383 = vector.extract_strided_slice %380 {offsets = [0, 64], sizes = [8, 32], strides = [1, 1]} : vector<8x128xf32> to vector<8x32xf32>
    %384 = vector.extract_strided_slice %379 {offsets = [0, 96], sizes = [8, 32], strides = [1, 1]} : vector<8x128xf32> to vector<8x32xf32>
    %385 = arith.mulf %382, %340 : vector<8x32xf32>
    %386 = arith.mulf %381, %383 : vector<8x32xf32>
    %387 = arith.addf %385, %386 : vector<8x32xf32>
    %388 = math.tanh %387 : vector<8x32xf32>
    %389 = arith.mulf %384, %388 : vector<8x32xf32>
    %390 = arith.truncf %389 : vector<8x32xf32> to vector<8x32xbf16>
    %391 = arith.index_cast %347 : i32 to index
    %c0_120 = arith.constant 0 : index
    %392 = vector.load %arg15[%391, %c0_120] : memref<64x32xbf16, #tpu.memory_space<vmem>>, vector<8x32xbf16>
    tpu.vector_store %arg15[%391, %c0_120], %390 {strides = array<i32>} : memref<64x32xbf16, #tpu.memory_space<vmem>>, vector<8x32xbf16>,
    %c8_i32_121 = arith.constant 8 : i32
    %393 = arith.extf %368 : vector<8x32xbf16> to vector<8x32xf32>
    %c0_122 = arith.constant 0 : index
    %c0_123 = arith.constant 0 : index
    %c0_124 = arith.constant 0 : index
    %394 = vector.load %arg12[%c0_122, %c0_123, %c0_124] : memref<2x8x32xf32, #tpu.memory_space<vmem>>, vector<1x8x32xf32>
    %395 = vector.shape_cast %394 : vector<1x8x32xf32> to vector<8x32xf32>
    %396 = vector.shape_cast %393 : vector<8x32xf32> to vector<1x8x32xf32>
    tpu.vector_store %arg12[%c0_122, %c0_123, %c0_124], %396 {strides = array<i32>} : memref<2x8x32xf32, #tpu.memory_space<vmem>>, vector<1x8x32xf32>,
    %397 = arith.extf %390 : vector<8x32xbf16> to vector<8x32xf32>
    %c1_125 = arith.constant 1 : index
    %c0_126 = arith.constant 0 : index
    %c0_127 = arith.constant 0 : index
    %398 = vector.load %arg12[%c1_125, %c0_126, %c0_127] : memref<2x8x32xf32, #tpu.memory_space<vmem>>, vector<1x8x32xf32>
    %399 = vector.shape_cast %398 : vector<1x8x32xf32> to vector<8x32xf32>
    %400 = vector.shape_cast %397 : vector<8x32xf32> to vector<1x8x32xf32>
    tpu.vector_store %arg12[%c1_125, %c0_126, %c0_127], %400 {strides = array<i32>} : memref<2x8x32xf32, #tpu.memory_space<vmem>>, vector<1x8x32xf32>,
    %c0_128 = arith.constant 0 : index
    %c0_129 = arith.constant 0 : index
    %c0_130 = arith.constant 0 : index
    %401 = vector.load %arg13[%c0_128, %c0_129, %c0_130] : memref<2x8x32xf32, #tpu.memory_space<vmem>>, vector<1x8x32xf32>
    %402 = vector.shape_cast %401 : vector<1x8x32xf32> to vector<8x32xf32>
    %403 = vector.shape_cast %365 : vector<8x32xf32> to vector<1x8x32xf32>
    tpu.vector_store %arg13[%c0_128, %c0_129, %c0_130], %403 {strides = array<i32>} : memref<2x8x32xf32, #tpu.memory_space<vmem>>, vector<1x8x32xf32>,
    %c1_131 = arith.constant 1 : index
    %c0_132 = arith.constant 0 : index
    %c0_133 = arith.constant 0 : index
    %404 = vector.load %arg13[%c1_131, %c0_132, %c0_133] : memref<2x8x32xf32, #tpu.memory_space<vmem>>, vector<1x8x32xf32>
    %405 = vector.shape_cast %404 : vector<1x8x32xf32> to vector<8x32xf32>
    %406 = vector.shape_cast %387 : vector<8x32xf32> to vector<1x8x32xf32>
    tpu.vector_store %arg13[%c1_131, %c0_132, %c0_133], %406 {strides = array<i32>} : memref<2x8x32xf32, #tpu.memory_space<vmem>>, vector<1x8x32xf32>,
    %c0_134 = arith.constant 0 : index
    %c0_135 = arith.constant 0 : index
    %407 = vector.load %arg15[%c0_134, %c0_135] : memref<64x32xbf16, #tpu.memory_space<vmem>>, vector<64x32xbf16>
    %c0_136 = arith.constant 0 : index
    %c0_137 = arith.constant 0 : index
    %408 = vector.load %arg7[%c0_136, %c0_137] : memref<32x128xbf16, #tpu.memory_space<vmem>>, vector<32x128xbf16>
    %cst_138 = arith.constant dense<0.000000e+00> : vector<64x128xf32>
    %409 = tpu.matmul %407, %408, %cst_138 {dimension_numbers = #tpu.dot_dimension_numbers<[1], [0], [0], [1], [0, 0, 1, 1], [], []>} : vector<64x32xbf16>, vector<32x128xbf16>, vector<64x128xf32> -> vector<64x128xf32>
    %c0_139 = arith.constant 0 : index
    %c0_140 = arith.constant 0 : index
    %410 = vector.load %arg8[%c0_139, %c0_140] : memref<1x128xf32, #tpu.memory_space<vmem>>, vector<1x128xf32>
    %411 = vector.broadcast %410 : vector<1x128xf32> to vector<64x128xf32>
    %412 = arith.addf %409, %411 : vector<64x128xf32>
    %c0_141 = arith.constant 0 : index
    %c0_142 = arith.constant 0 : index
    %413 = vector.load %arg11[%c0_141, %c0_142] : memref<64x128xf32, #tpu.memory_space<vmem>>, vector<64x128xf32>
    tpu.vector_store %arg11[%c0_141, %c0_142], %412 {strides = array<i32>} : memref<64x128xf32, #tpu.memory_space<vmem>>, vector<64x128xf32>,
    return
  }
  func.func @transform_0(%arg0: i32) -> (i32, i32) {
    %c0_i32 = arith.constant 0 : i32
    %c0_i32_0 = arith.constant 0 : i32
    %c0_i32_1 = arith.constant 0 : i32
    return %c0_i32, %c0_i32_0 : i32, i32
  }
  func.func @transform_1(%arg0: i32) -> (i32, i32) {
    %c0_i32 = arith.constant 0 : i32
    %c0_i32_0 = arith.constant 0 : i32
    %c0_i32_1 = arith.constant 0 : i32
    return %c0_i32, %c0_i32_0 : i32, i32
  }
  func.func @transform_2(%arg0: i32) -> (i32, i32) {
    %c0_i32 = arith.constant 0 : i32
    %c0_i32_0 = arith.constant 0 : i32
    %c0_i32_1 = arith.constant 0 : i32
    return %c0_i32, %c0_i32_0 : i32, i32
  }
  func.func @transform_3(%arg0: i32) -> (i32, i32) {
    %c0_i32 = arith.constant 0 : i32
    %c0_i32_0 = arith.constant 0 : i32
    %c0_i32_1 = arith.constant 0 : i32
    return %c0_i32, %c0_i32_0 : i32, i32
  }
  func.func @transform_4(%arg0: i32) -> (i32, i32) {
    %c0_i32 = arith.constant 0 : i32
    %c0_i32_0 = arith.constant 0 : i32
    %c0_i32_1 = arith.constant 0 : i32
    return %c0_i32, %c0_i32_0 : i32, i32
  }
  func.func @transform_5(%arg0: i32) -> (i32, i32) {
    %c0_i32 = arith.constant 0 : i32
    %c0_i32_0 = arith.constant 0 : i32
    %c0_i32_1 = arith.constant 0 : i32
    return %c0_i32, %c0_i32_0 : i32, i32
  }
  func.func @transform_6(%arg0: i32) -> (i32, i32) {
    %c0_i32 = arith.constant 0 : i32
    %c0_i32_0 = arith.constant 0 : i32
    %c0_i32_1 = arith.constant 0 : i32
    return %c0_i32, %c0_i32_0 : i32, i32
  }
  func.func @transform_7(%arg0: i32) -> (i32, i32) {
    %c0_i32 = arith.constant 0 : i32
    %c0_i32_0 = arith.constant 0 : i32
    %c0_i32_1 = arith.constant 0 : i32
    return %c0_i32, %c0_i32_0 : i32, i32
  }
  func.func @transform_8(%arg0: i32) -> (i32, i32, i32) {
    %c0_i32 = arith.constant 0 : i32
    %c0_i32_0 = arith.constant 0 : i32
    %c0_i32_1 = arith.constant 0 : i32
    %c0_i32_2 = arith.constant 0 : i32
    return %c0_i32, %c0_i32_0, %c0_i32_1 : i32, i32, i32
  }
  func.func @transform_9(%arg0: i32) -> (i32, i32, i32) {
    %c0_i32 = arith.constant 0 : i32
    %c0_i32_0 = arith.constant 0 : i32
    %c0_i32_1 = arith.constant 0 : i32
    %c0_i32_2 = arith.constant 0 : i32
    return %c0_i32, %c0_i32_0, %c0_i32_1 : i32, i32, i32
  }
  func.func @transform_10(%arg0: i32) -> (i32, i32) {
    %c0_i32 = arith.constant 0 : i32
    %c0_i32_0 = arith.constant 0 : i32
    %c0_i32_1 = arith.constant 0 : i32
    return %c0_i32, %c0_i32_0 : i32, i32
  }
  func.func @transform_11(%arg0: i32) -> (i32, i32, i32) {
    %c0_i32 = arith.constant 0 : i32
    %c0_i32_0 = arith.constant 0 : i32
    %c0_i32_1 = arith.constant 0 : i32
    %c0_i32_2 = arith.constant 0 : i32
    return %c0_i32, %c0_i32_0, %c0_i32_1 : i32, i32, i32
  }
  func.func @transform_12(%arg0: i32) -> (i32, i32, i32) {
    %c0_i32 = arith.constant 0 : i32
    %c0_i32_0 = arith.constant 0 : i32
    %c0_i32_1 = arith.constant 0 : i32
    %c0_i32_2 = arith.constant 0 : i32
    return %c0_i32, %c0_i32_0, %c0_i32_1 : i32, i32, i32
  }
}

</mosaic_0001>

<bundles_post_ra>
// kernel: tpu_custom_call.1
= control target key start
LH: loop header
LB: loop body
LE: loop exit
PB: predicated region body
PF: predicated region fallthrough
CT: control target
= control target key end

     0   :  { %18 = vsyncpa [#allocation5], 0  ;;  %s3457_s0 = inlined_call_operand.vmem [shape: bf16[64,16], index: 0, kind: input, shape index: {}]   ;;  %s3458_s1 = inlined_call_operand.hbm [shape: bf16[16,128], index: 1, kind: input, shape index: {}]   ;;  %s3459_s2 = inlined_call_operand.hbm [shape: bf16[32,128], index: 2, kind: input, shape index: {}]   ;;  %s3460_s3 = inlined_call_operand.vmem [shape: f32[1,128], index: 3, kind: input, shape index: {}]   ;;  %s3461_s4 = inlined_call_operand.vmem [shape: bf16[64,128], index: 4, kind: input, shape index: {}]   ;;  %s3462_s5 = inlined_call_operand.hbm [shape: f32[1,128], index: 5, kind: input, shape index: {}]   ;;  %s3463_s6 = inlined_call_operand.vmem [shape: bf16[32,128], index: 6, kind: input, shape index: {}]   ;;  %s3464_s7 = inlined_call_operand.vmem [shape: f32[1,128], index: 7, kind: input, shape index: {}]   ;;  %s3465_s8 = inlined_call_operand.hbm [shape: f32[2,8,32], index: 8, kind: input, shape index: {}]   ;;  %s3466_s9 = inlined_call_operand.hbm [shape: f32[2,8,32], index: 9, kind: input, shape index: {}]   ;;  %s3467_s10 = inlined_call_operand.hbm [shape: f32[64,128], index: 10, kind: output, shape index: {0}]   ;;  %s3468_s11 = inlined_call_operand.hbm [shape: f32[2,8,32], index: 11, kind: output, shape index: {1}]   ;;  %s3469_s12 = inlined_call_operand.hbm [shape: f32[2,8,32], index: 12, kind: output, shape index: {2}]  }
   0x1   :  { %19 = vsyncpa [#allocation8], 0 }
   0x2   :  { %20 = vsyncpa [#allocation11], 0 }
   0x3   :  { %21 = vsyncpa [#allocation6], 0 }
   0x4   :  { %22 = vsyncpa [#allocation15], 0  ;;  %s2890_s21 = smov [#allocation7]   ;;  %s2891_s23 = smov [#allocation10]  }
   0x5   :  { %s42_s22 = sshll.u32 %s2890_s21, 4  ;;  %s72_s24 = sshll.u32 %s2891_s23, 4  ;;  %s43_s22 = int_to_ptr.vmem [resolvable:$true] %s42_s22  ;;  %s73_s24 = int_to_ptr.vmem [resolvable:$true] %s72_s24 }
   0x6   :  { %s2728_s25 = scalar_lea.vmem %s43_s22, 256  ;;  %p2733_p1 = scmp.lt.s32.totalorder %s43_s22, %s43_s22 }
   0x7   :  { %p2729_p0 = scmp.ne.s32.totalorder %s43_s22, %s2728_s25  ;;  %p2734_p2 = scmp.lt.s32.totalorder %s2728_s25, %s2728_s25 }
   0x9   :  { %p2735_p3 = por %p2734_p2, %p2733_p1 }
   0xb   :  { %p2736_p4 = pnand %p2735_p3, %p2729_p0 }
   0xd   :  { %2739 = shalt.err (!%p2736_p4)
}
   0xe   :  { %s2892_s26 = smov 64   ;;  %s2893_s27 = smov 4  }
   0xf   :  { %48 = dma.hbm_to_vmem [thread:$0]  %s3459_s2, 256, %s43_s22, [#allocation8], %s2892_s26, %s2892_s26, %s2893_s27  }
  0x10   :  { %s2748_s30 = scalar_lea.vmem %s73_s24, 256  ;;  %p2753_p6 = scmp.lt.s32.totalorder %s73_s24, %s73_s24 }
  0x11   :  { %p2749_p5 = scmp.ne.s32.totalorder %s73_s24, %s2748_s30  ;;  %p2754_p7 = scmp.lt.s32.totalorder %s2748_s30, %s2748_s30 }
  0x13   :  { %p2755_p8 = por %p2754_p7, %p2753_p6 }
  0x15   :  { %p2756_p9 = pnand %p2755_p8, %p2749_p5 }
  0x17   :  { %2759 = shalt.err (!%p2756_p9)
}
  0x18   :  { %s2894_s13 = smov 128   ;;  %s2895_s14 = smov 8  }
  0x19   :  { %78 = dma.hbm_to_vmem [thread:$0]  %s3465_s8, 256, %s73_s24, [#allocation11], %s2894_s13, %s2894_s13, %s2895_s14  }
  0x1a   :  { %s2896_s17 = smov [#allocation4]   ;;  %s2897_s19 = smov [#allocation9]  }
  0x1b   :  { %s30_s18 = sshll.u32 %s2896_s17, 4  ;;  %s59_s2 = sshll.u32 %s2897_s19, 4  ;;  %s31_s18 = int_to_ptr.vmem [resolvable:$true] %s30_s18  ;;  %s60_s2 = int_to_ptr.vmem [resolvable:$true] %s59_s2 }
  0x1c   :  { %s2768_s20 = scalar_lea.vmem %s31_s18, 128  ;;  %p2773_p11 = scmp.lt.s32.totalorder %s31_s18, %s31_s18 }
  0x1d   :  { %p2769_p10 = scmp.ne.s32.totalorder %s31_s18, %s2768_s20  ;;  %p2774_p12 = scmp.lt.s32.totalorder %s2768_s20, %s2768_s20 }
  0x1f   :  { %p2775_p13 = por %p2774_p12, %p2773_p11 }
  0x21   :  { %p2776_p0 = pnand %p2775_p13, %p2769_p10 }
  0x23   :  { %2779 = shalt.err (!%p2776_p0)
}
  0x24   :  { %36 = dma.hbm_to_vmem [thread:$0]  %s3458_s1, 128, %s31_s18, [#allocation5], %s2892_s26, %s2892_s26, %s2893_s27  }
  0x25   :  { %s2788_s8 = scalar_lea.vmem %s60_s2, 16  ;;  %s2792_s23 = scalar_lea.vmem %s60_s2, 32 }
  0x26   :  { %p2789_p1 = scmp.ne.s32.totalorder %s60_s2, %s2788_s8  ;;  %p2793_p2 = scmp.lt.s32.totalorder %s60_s2, %s60_s2 }
  0x27   :  { %p2794_p3 = scmp.lt.s32.totalorder %s2792_s23, %s2788_s8 }
  0x29   :  { %p2795_p4 = por %p2794_p3, %p2793_p2 }
  0x2b   :  { %p2796_p5 = pnand %p2795_p4, %p2789_p1 }
  0x2d   :  { %2799 = shalt.err (!%p2796_p5)
}
  0x2e   :  { %62 = dma.hbm_to_vmem [thread:$0]  %s3462_s5, 16, %s60_s2, [#allocation8]  }
  0x2f   :  { %s2898_s28 = smov [#allocation12]  }
  0x30   :  { %s84_s29 = sshll.u32 %s2898_s28, 4  ;;  %s85_s29 = int_to_ptr.vmem [resolvable:$true] %s84_s29 }
  0x31   :  { %s2808_s30 = scalar_lea.vmem %s85_s29, 256  ;;  %p2813_p7 = scmp.lt.s32.totalorder %s85_s29, %s85_s29 }
  0x32   :  { %p2809_p6 = scmp.ne.s32.totalorder %s85_s29, %s2808_s30  ;;  %p2814_p8 = scmp.lt.s32.totalorder %s2808_s30, %s2808_s30 }
  0x34   :  { %p2815_p9 = por %p2814_p8, %p2813_p7 }
  0x36   :  { %p2816_p10 = pnand %p2815_p9, %p2809_p6 }
  0x38   :  { %2819 = shalt.err (!%p2816_p10)
}
  0x39   :  { %90 = dma.hbm_to_vmem [thread:$0]  %s3466_s9, 256, %s85_s29, [#allocation11], %s2894_s13, %s2894_s13, %s2895_s14  }
  0x3a   :  { %2880 = dma.done.wait [#allocation5], 128  }
  0x3b   :  { %2881 = vsyncadd [#allocation5], 4294967168 }
  0x3c   :  { %2882 = dma.done.wait [#allocation8], 272  }
  0x3d   :  { %2883 = vsyncadd [#allocation8], 4294967024 }
  0x3e   :  { %2884 = dma.done.wait [#allocation11], 512  }
  0x3f   :  { %2885 = vsyncadd [#allocation11], 4294966784  ;;  %v2899_v0 = vmov 0.0   ;;  %vm2900_vm0 = vmmov 0   ;;  %v2532_v1 = vld [vmem:[#allocation4] sm:$0xff]   ;;  %v2533_v2 = vld [vmem:[#allocation7 + $0x8] sm:$0xff]  }
  0x40   :  { %2339 = vmatprep.subr.bf16.mxu1 %v2899_v0  ;;  %2343 = vmatprep.mubr.msk.bf16.mxu1 %vm2900_vm0, %v2899_v0  ;;  %vm150_vm1 = vcmask 130048   ;;  %v2534_v3 = vld [vmem:[%s3457_s0] sm:$0xff]   ;;  %v2535_v4 = vld [vmem:[%s3457_s0 + $0x8] sm:$0xff]   ;;  %v2536_v5 = vld [vmem:[#allocation7] sm:$0xff]   ;;  %vm261_vm2 = vcmask 261120   ;;  %s2901_s19 = smov 32  }
  0x41   :  { %2329 = vmatprep.subr.bf16.mxu0 %v2532_v1  ;;  %2340 = vmatpush3.bf16.msra.mxu1 %v2533_v2  ;;  %v236_v6 = vld [vmem:[#allocation10] sm:$0xff]  ;;  %v3018_v9 = vld [vmem:[%s3460_s3] ss:$0 sm:$0xff]  ;;  %v2537_v29 = vld [vmem:[%s3461_s4 + $0x18] sm:$0xff]   ;;  %vm383_vm3 = vcmask 523264   ;;  %vm461_vm4 = vcmask 257024  }
  0x42   :  { %2330 = vmatpush3.bf16.msra.mxu0 %v2532_v1  ;;  %2331 = vmatprep.mubr.msk.bf16.mxu0 %vm150_vm1, %v2534_v3  ;;  %v237_v7 = vpack.c.bf16 %v236_v6, %v236_v6  ;;  %v238_v18 = vld [vmem:[#allocation12] sm:$0xff]  ;;  %v2538_v30 = vld [vmem:[%s3457_s0 + $0x10] sm:$0xff]   ;;  %v2541_v36 = vld [vmem:[%s3461_s4 + $0x8] sm:$0xff]  }
  0x43   :  { %2341 = vmatprep.subr.bf16.mxu1 %v2899_v0  ;;  %2347 = vmatprep.subr.bf16.mxu0 %v2899_v0  ;;  %v2539_v31 = vld [vmem:[%s3457_s0 + $0x18] sm:$0xff]   ;;  %v2542_v32 = vld [vmem:[#allocation7 + $0x8] sm:$0xff]   ;;  %v2540_v33 = vld [vmem:[%s3461_s4 + $0x10] sm:$0xff]  }
  0x44   :  { %v2544_v34 = vld [vmem:[#allocation7] sm:$0xff]   ;;  %v2543_v39 = vld [vmem:[%s3461_s4] sm:$0xff]   ;;  %v3076_v53 = vld [vmem:[#allocation9] ss:$0 sm:$0xff] }
  0x45   :  { %2332 = vmatmul.mubr.msk.bf16.vlgmr.msra.gmra.mxu0 %vm150_vm1, %v2535_v4  ;;  %2342 = vmatpush3.bf16.msra.mxu1 %v2536_v5  ;;  %v240_v35 = vld [vmem:[#allocation10 + $0x8] sm:$0xff]  ;;  %v243_v3 = vld [vmem:[#allocation12 + $0x8] sm:$0xff] }
  0x46   :  { %2359 = vmatprep.subr.bf16.mxu1 %v2899_v0  ;;  %2348 = vmatpush3.bf16.msra.mxu0 %v2537_v29  ;;  %v241_v38 = vpack.c.bf16 %v240_v35, %v240_v35  ;;  %v2548_v29 = vld [vmem:[%s3461_s4 + $0x8] sm:$0xff]  }
  0x47   :  { %2335 = vmatprep.mubr.msk.bf16.mxu0 %vm150_vm1, %v2538_v30  ;;  %2349 = vmatprep.subr.bf16.mxu0 %v2899_v0 }
  0x48   :  { %2344 = vmatmul.mubr.msk.bf16.vlgmr.msra.gmra.mxu1 %vm261_vm2, %v237_v7 }
  0x49   :  { %2363 = vmatprep.mubr.msk.bf16.mxu1 %vm2900_vm0, %v2899_v0  ;;  %2360 = vmatpush3.bf16.msra.mxu1 %v2542_v32  ;;  %v2550_v32 = vld [vmem:[%s3461_s4] sm:$0xff]  }
  0x4a   :  { %2361 = vmatprep.subr.bf16.mxu1 %v2899_v0  ;;  %2350 = vmatpush3.bf16.msra.mxu0 %v2540_v33 }
  0x4b   :  { %2351 = vmatprep.subr.bf16.mxu0 %v2899_v0 }
  0x4d   :  { %2336 = vmatmul.mubr.msk.bf16.gmra.mxu0 %vm150_vm1, %v2539_v31  ;;  %2362 = vmatpush3.bf16.msra.mxu1 %v2544_v34 }
  0x4e   :  { %2355 = vmatprep.mubr.msk.bf16.mxu0 %vm2900_vm0, %v2899_v0  ;;  %2367 = vmatprep.subr.bf16.mxu1 %v2899_v0 }
  0x4f   :  { %2352 = vmatpush3.bf16.msra.mxu0 %v2541_v36 }
  0x50   :  { %2353 = vmatprep.subr.bf16.mxu0 %v2899_v0 }
  0x53   :  { %2354 = vmatpush3.bf16.msra.mxu0 %v2543_v39 }
  0x54   :  { %2379 = vmatprep.subr.bf16.mxu0 %v2899_v0 }
 0x105   :  { %v3013_v8 = vpop.f32.mrf.mxu0 }
 0x107   :  { %v197_v10 = vpop.f32.mrf.mxu0 }
 0x108   :  { %v198_v11 = vadd.f32 %v3018_v9, %v197_v10  ;;  %v299_v12 = vpop.f32.mrf.mxu1 }
 0x109   :  { %v3065_v46 = vpop.f32.mrf.mxu0 }
 0x10a   :  { %v305_v13 = vadd.f32 %v299_v12, %v198_v11  ;;  %v2345_v14 = vpop.f32.mrf.mxu1 }
 0x10b   :  { %v200_v47 = vpop.f32.mrf.mxu0 }
 0x10c   :  { %2591 = vtanh.f32 %v305_v13  ;;  %v302_v15 = vpop.f32.mrf.mxu1  ;;  %v2142_v19 = vmul.f32 -1.442695, %v305_v13  ;;  %v201_v51 = vadd.f32 %v3018_v9, %v200_v47 }
 0x10d   :  { %v3067_v48 = vpop.f32.mrf.mxu0 }
 0x10e   :  { %v2346_v16 = vpop.f32.mrf.mxu1  ;;  %2593 = vpow2.f32 %v2142_v19 }
 0x10f   :  { %v3069_v49 = vpop.f32.mrf.mxu0 }
 0x111   :  { %v3071_v50 = vpop.f32.mrf.mxu0 }
 0x113   :  { %v3074_v52 = vpop.f32.mrf.mxu0 }
 0x119   :  { %v2592_v17 = vpop.eup %2591 }
 0x11a   :  { %319 = vrot.lane.b32.xlu0 %v2592_v17, %s2892_s26 }
 0x11b   :  { %v2594_v20 = vpop.eup %2593 }
 0x11c   :  { %v309_v21 = vadd.f32 1.0, %v2594_v20 }
 0x11e   :  { %314 = vrot.lane.b32.xlu0 %v238_v18, %s2901_s19  ;;  %2595 = vrcp.f32 %v309_v21 }
 0x12b   :  { %v2596_v22 = vpop.eup %2595 }
 0x18c   :  { %v320_v23 = vpop.permute.xlu0 %319 }
 0x18d   :  { %v322_v24 = vmul.f32 %v2596_v22, %v320_v23 }
 0x18f   :  { %324 = vrot.lane.b32.xlu1 %v322_v24, %s2901_s19 }
 0x190   :  { %v315_v25 = vpop.permute.xlu0 %314 }
 0x191   :  { %v317_v26 = vmul.f32 %v2596_v22, %v315_v25  ;;  %v2545_v25 = vld [vmem:[%s3461_s4 + $0x18] sm:$0xff]  }
 0x201   :  { %v325_v27 = vpop.permute.xlu1 %324 }
 0x202   :  { %v3024_v28 = vadd.f32 %v325_v27, %v317_v26  ;;  %v2547_v26 = vld [vmem:[#allocation7 + $0x8] sm:$0xff]   ;;  %v2546_v27 = vld [vmem:[%s3461_s4 + $0x10] sm:$0xff]  }
 0x204   :  { %2597 = vtanh.f32 %v3024_v28 }
 0x211   :  { %v2598_v37 = vpop.eup %2597 }
 0x212   :  { %330 = vrot.lane.b32.xlu1 %v2598_v37, %s2892_s26 }
 0x216   :  { %339 = vrot.lane.b32.xlu1 %v241_v38, %s2901_s19 }
 0x284   :  { %v331_v40 = vpop.permute.xlu1 %330 }
 0x285   :  { %v333_v41 = vmul.f32 %v2596_v22, %v331_v40 }
 0x287   :  { %v334_v42 = vpack.c.bf16 %v333_v41, %v333_v41 }
 0x288   :  { %v340_v43 = vpop.permute.xlu1 %339 }
 0x289   :  { %336 = vrot.lane.b32.xlu0 %v334_v42, %s2901_s19  ;;  %v206_v42 = vadd.f32 %v3013_v8, %v3018_v9 }
 0x2fb   :  { %v337_v44 = vpop.permute.xlu0 %336 }
 0x2fc   :  { %v343_v45 = vsel %vm261_vm2, %v337_v44, %v340_v43  ;;  %2364 = vmatmul.mubr.msk.bf16.vlgmr.msra.gmra.mxu1 %vm261_vm2, %v337_v44 }
 0x2fd   :  { %2356 = vmatmul.mubr.msk.bf16.vlgmr.msra.gmra.mxu0 %vm383_vm3, %v343_v45  ;;  %2375 = vmatprep.mubr.msk.bf16.mxu1 %vm2900_vm0, %v2899_v0 }
 0x2fe   :  { %2383 = vmatprep.mubr.msk.bf16.mxu0 %vm2900_vm0, %v2899_v0  ;;  %2368 = vmatpush3.bf16.msra.mxu1 %v2545_v25 }
 0x2ff   :  { %2380 = vmatpush3.bf16.msra.mxu0 %v2547_v26  ;;  %2369 = vmatprep.subr.bf16.mxu1 %v2899_v0 }
 0x300   :  { %2381 = vmatprep.subr.bf16.mxu0 %v2899_v0 }
 0x302   :  { %2370 = vmatpush3.bf16.msra.mxu1 %v2546_v27 }
 0x303   :  { %2371 = vmatprep.subr.bf16.mxu1 %v2899_v0 }
 0x306   :  { %2372 = vmatpush3.bf16.msra.mxu1 %v2548_v29 }
 0x307   :  { %2373 = vmatprep.subr.bf16.mxu1 %v2899_v0 }
 0x30a   :  { %2374 = vmatpush3.bf16.msra.mxu1 %v2550_v32 }
 0x30b   :  { %2399 = vmatprep.subr.bf16.mxu1 %v2899_v0 }
 0x3bc   :  { %v517_v54 = vpop.f32.mrf.mxu1 }
 0x3bd   :  { %v523_v55 = vadd.f32 %v517_v54, %v201_v51  ;;  %v420_v56 = vpop.f32.mrf.mxu0 }
 0x3be   :  { %v421_v57 = vadd.f32 %v3076_v53, %v420_v56  ;;  %v2365_v58 = vpop.f32.mrf.mxu1 }
 0x3bf   :  { %2599 = vtanh.f32 %v523_v55  ;;  %v2357_v59 = vpop.f32.mrf.mxu0  ;;  %v2154_v4 = vmul.f32 -1.442695, %v523_v55 }
 0x3c0   :  { %2601 = vtanh.f32 %v421_v57  ;;  %v520_v60 = vpop.f32.mrf.mxu1  ;;  %v2149_v5 = vmul.f32 -1.442695, %v421_v57 }
 0x3c1   :  { %v423_v61 = vpop.f32.mrf.mxu0  ;;  %2603 = vpow2.f32 %v2154_v4 }
 0x3c2   :  { %v2366_v62 = vpop.f32.mrf.mxu1  ;;  %2605 = vpow2.f32 %v2149_v5 }
 0x3c3   :  { %v2358_v63 = vpop.f32.mrf.mxu0 }
 0x3cc   :  { %v2600_v1 = vpop.eup %2599 }
 0x3cd   :  { %v2602_v2 = vpop.eup %2601  ;;  %533 = vrot.lane.b32.xlu1 %v2600_v1, %s2892_s26 }
 0x3ce   :  { %439 = vrot.lane.b32.xlu0 %v2602_v2, %s2892_s26  ;;  %v2604_v6 = vpop.eup %2603 }
 0x3cf   :  { %v2606_v7 = vpop.eup %2605  ;;  %v527_v10 = vadd.f32 1.0, %v2604_v6 }
 0x3d0   :  { %v429_v11 = vadd.f32 1.0, %v2606_v7 }
 0x3d1   :  { %2607 = vrcp.f32 %v527_v10 }
 0x3d2   :  { %434 = vrot.lane.b32.xlu0 %v243_v3, %s2901_s19  ;;  %2609 = vrcp.f32 %v429_v11 }
 0x3de   :  { %v2608_v12 = vpop.eup %2607 }
 0x3df   :  { %v2610_v14 = vpop.eup %2609  ;;  %v531_v19 = vmul.f32 %v2608_v12, %v3024_v28  ;;  %v2549_v28 = vld [vmem:[#allocation7] sm:$0xff]  }
 0x3e0   :  { %2382 = vmatpush3.bf16.msra.mxu0 %v2549_v28 }
 0x3e1   :  { %2387 = vmatprep.subr.bf16.mxu0 %v2899_v0 }
 0x43f   :  { %v534_v13 = vpop.permute.xlu1 %533 }
 0x440   :  { %v536_v15 = vmul.f32 %v2608_v12, %v534_v13  ;;  %v440_v16 = vpop.permute.xlu0 %439 }
 0x441   :  { %v442_v17 = vmul.f32 %v2610_v14, %v440_v16 }
 0x442   :  { %538 = vrot.lane.b32.xlu0 %v536_v15, %s2901_s19 }
 0x443   :  { %444 = vrot.lane.b32.xlu1 %v442_v17, %s2901_s19  ;;  %v2551_v17 = vld [vmem:[%s3461_s4 + $0x18] sm:$0xff]  }
 0x444   :  { %v435_v18 = vpop.permute.xlu0 %434 }
 0x445   :  { %v437_v20 = vmul.f32 %v2610_v14, %v435_v18  ;;  %v2553_v18 = vld [vmem:[#allocation7 + $0x8] sm:$0xff]  }
 0x4b4   :  { %v539_v21 = vpop.permute.xlu0 %538 }
 0x4b5   :  { %v3085_v22 = vadd.f32 %v539_v21, %v531_v19  ;;  %v445_v23 = vpop.permute.xlu1 %444  ;;  %v2552_v19 = vld [vmem:[%s3461_s4 + $0x10] sm:$0xff]  }
 0x4b6   :  { %v3087_v24 = vadd.f32 %v445_v23, %v437_v20  ;;  %v2555_v20 = vld [vmem:[#allocation7] sm:$0xff]  }
 0x4b7   :  { %2611 = vtanh.f32 %v3085_v22 }
 0x4b8   :  { %2613 = vtanh.f32 %v3087_v24 }
 0x4c4   :  { %v2612_v30 = vpop.eup %2611 }
 0x4c5   :  { %v2614_v31 = vpop.eup %2613  ;;  %544 = vrot.lane.b32.xlu0 %v2612_v30, %s2892_s26 }
 0x4c6   :  { %450 = vrot.lane.b32.xlu1 %v2614_v31, %s2892_s26 }
 0x537   :  { %v545_v33 = vpop.permute.xlu0 %544 }
 0x538   :  { %v547_v34 = vmul.f32 %v2608_v12, %v545_v33  ;;  %v451_v35 = vpop.permute.xlu1 %450 }
 0x539   :  { %v453_v36 = vmul.f32 %v2610_v14, %v451_v35 }
 0x53a   :  { %v548_v37 = vpack.c.bf16 %v547_v34, %v547_v34  ;;  %v209_v34 = vadd.f32 %v3065_v46, %v3018_v9 }
 0x53b   :  { %v3111_v38 = vpack.c.bf16 %v453_v36, %v453_v36 }
 0x53c   :  { %550 = vrot.lane.b32.xlu1 %v548_v37, %s2901_s19 }
 0x53d   :  { %552 = vrot.lane.b32.xlu0 %v3111_v38, %s2892_s26 }
 0x5ae   :  { %v551_v39 = vpop.permute.xlu1 %550 }
 0x5af   :  { %v553_v40 = vpop.permute.xlu0 %552  ;;  %2384 = vmatmul.mubr.msk.bf16.vlgmr.msra.gmra.mxu0 %vm261_vm2, %v551_v39 }
 0x5b0   :  { %v556_v41 = vsel %vm261_vm2, %v551_v39, %v553_v40  ;;  %2395 = vmatprep.mubr.msk.bf16.mxu0 %vm2900_vm0, %v2899_v0  ;;  %2388 = vmatpush3.bf16.msra.mxu0 %v2551_v17 }
 0x5b1   :  { %2376 = vmatmul.mubr.msk.bf16.vlgmr.msra.gmra.mxu1 %vm383_vm3, %v556_v41  ;;  %2389 = vmatprep.subr.bf16.mxu0 %v2899_v0 }
 0x5b2   :  { %2403 = vmatprep.mubr.msk.bf16.mxu1 %vm2900_vm0, %v2899_v0  ;;  %2400 = vmatpush3.bf16.msra.mxu1 %v2553_v18 }
 0x5b3   :  { %2401 = vmatprep.subr.bf16.mxu1 %v2899_v0 }
 0x5b4   :  { %2390 = vmatpush3.bf16.msra.mxu0 %v2552_v19 }
 0x5b5   :  { %2391 = vmatprep.subr.bf16.mxu0 %v2899_v0 }
 0x5b6   :  { %2402 = vmatpush3.bf16.msra.mxu1 %v2555_v20 }
 0x5b7   :  { %2407 = vmatprep.subr.bf16.mxu1 %v2899_v0 }
 0x66f   :  { %v725_v43 = vpop.f32.mrf.mxu0 }
 0x670   :  { %v731_v44 = vadd.f32 %v725_v43, %v206_v42 }
 0x671   :  { %v632_v45 = vpop.f32.mrf.mxu1  ;;  %v2385_v47 = vpop.f32.mrf.mxu0 }
 0x672   :  { %2615 = vtanh.f32 %v731_v44  ;;  %v633_v51 = vadd.f32 %v3076_v53, %v632_v45  ;;  %v2166_v8 = vmul.f32 -1.442695, %v731_v44 }
 0x673   :  { %v2377_v54 = vpop.f32.mrf.mxu1  ;;  %v728_v55 = vpop.f32.mrf.mxu0 }
 0x674   :  { %2617 = vtanh.f32 %v633_v51  ;;  %v2161_v61 = vmul.f32 -1.442695, %v633_v51 }
 0x675   :  { %v635_v56 = vpop.f32.mrf.mxu1  ;;  %v2386_v57 = vpop.f32.mrf.mxu0  ;;  %2619 = vpow2.f32 %v2166_v8 }
 0x676   :  { %2621 = vpow2.f32 %v2161_v61 }
 0x677   :  { %v2378_v58 = vpop.f32.mrf.mxu1 }
 0x67f   :  { %v2616_v59 = vpop.eup %2615 }
 0x680   :  { %741 = vrot.lane.b32.xlu0 %v2616_v59, %s2892_s26 }
 0x681   :  { %v2618_v60 = vpop.eup %2617 }
 0x682   :  { %647 = vrot.lane.b32.xlu1 %v2618_v60, %s2892_s26  ;;  %v2620_v62 = vpop.eup %2619 }
 0x683   :  { %v2622_v63 = vpop.eup %2621  ;;  %v735_v1 = vadd.f32 1.0, %v2620_v62 }
 0x684   :  { %v641_v2 = vadd.f32 1.0, %v2622_v63 }
 0x685   :  { %2623 = vrcp.f32 %v735_v1 }
 0x686   :  { %2625 = vrcp.f32 %v641_v2 }
 0x692   :  { %v2624_v3 = vpop.eup %2623 }
 0x693   :  { %v2626_v6 = vpop.eup %2625  ;;  %v739_v11 = vmul.f32 %v2624_v3, %v3085_v22  ;;  %v2554_v22 = vld [vmem:[%s3461_s4 + $0x8] sm:$0xff]  }
 0x694   :  { %v645_v14 = vmul.f32 %v2626_v6, %v3087_v24  ;;  %2392 = vmatpush3.bf16.msra.mxu0 %v2554_v22  ;;  %v2556_v24 = vld [vmem:[%s3461_s4] sm:$0xff]  }
 0x695   :  { %2393 = vmatprep.subr.bf16.mxu0 %v2899_v0 }
 0x698   :  { %2394 = vmatpush3.bf16.msra.mxu0 %v2556_v24 }
 0x699   :  { %2419 = vmatprep.subr.bf16.mxu0 %v2899_v0 }
 0x6f2   :  { %v742_v4 = vpop.permute.xlu0 %741 }
 0x6f3   :  { %v744_v5 = vmul.f32 %v2624_v3, %v742_v4 }
 0x6f4   :  { %v648_v7 = vpop.permute.xlu1 %647 }
 0x6f5   :  { %746 = vrot.lane.b32.xlu0 %v744_v5, %s2901_s19  ;;  %v650_v10 = vmul.f32 %v2626_v6, %v648_v7  ;;  %v2557_v7 = vld [vmem:[%s3461_s4 + $0x18] sm:$0xff]  }
 0x6f7   :  { %652 = vrot.lane.b32.xlu1 %v650_v10, %s2901_s19  ;;  %v2559_v10 = vld [vmem:[#allocation7 + $0x8] sm:$0xff]  }
 0x767   :  { %v747_v12 = vpop.permute.xlu0 %746 }
 0x768   :  { %v3131_v13 = vadd.f32 %v747_v12, %v739_v11  ;;  %v2558_v11 = vld [vmem:[%s3461_s4 + $0x10] sm:$0xff]   ;;  %v2561_v12 = vld [vmem:[#allocation7] sm:$0xff]  }
 0x769   :  { %v653_v15 = vpop.permute.xlu1 %652 }
 0x76a   :  { %2627 = vtanh.f32 %v3131_v13  ;;  %v3135_v16 = vadd.f32 %v653_v15, %v645_v14  ;;  %v2560_v14 = vld [vmem:[%s3461_s4 + $0x8] sm:$0xff]  }
 0x76c   :  { %2629 = vtanh.f32 %v3135_v16 }
 0x777   :  { %v2628_v21 = vpop.eup %2627 }
 0x778   :  { %752 = vrot.lane.b32.xlu0 %v2628_v21, %s2892_s26 }
 0x779   :  { %v2630_v23 = vpop.eup %2629 }
 0x77a   :  { %658 = vrot.lane.b32.xlu1 %v2630_v23, %s2892_s26 }
 0x7ea   :  { %v753_v25 = vpop.permute.xlu0 %752 }
 0x7eb   :  { %v755_v26 = vmul.f32 %v2624_v3, %v753_v25 }
 0x7ec   :  { %v659_v28 = vpop.permute.xlu1 %658 }
 0x7ed   :  { %v756_v27 = vpack.c.bf16 %v755_v26, %v755_v26  ;;  %v661_v29 = vmul.f32 %v2626_v6, %v659_v28  ;;  %v214_v26 = vadd.f32 %v3018_v9, %v3069_v49 }
 0x7ef   :  { %758 = vrot.lane.b32.xlu1 %v756_v27, %s2901_s19  ;;  %v3159_v30 = vpack.c.bf16 %v661_v29, %v661_v29 }
 0x7f1   :  { %760 = vrot.lane.b32.xlu0 %v3159_v30, %s2892_s26 }
 0x861   :  { %v759_v31 = vpop.permute.xlu1 %758 }
 0x862   :  { %2404 = vmatmul.mubr.msk.bf16.vlgmr.msra.gmra.mxu1 %vm261_vm2, %v759_v31 }
 0x863   :  { %2415 = vmatprep.mubr.msk.bf16.mxu1 %vm2900_vm0, %v2899_v0  ;;  %v761_v32 = vpop.permute.xlu0 %760  ;;  %2408 = vmatpush3.bf16.msra.mxu1 %v2557_v7 }
 0x864   :  { %v764_v33 = vsel %vm261_vm2, %v759_v31, %v761_v32  ;;  %2409 = vmatprep.subr.bf16.mxu1 %v2899_v0 }
 0x865   :  { %2396 = vmatmul.mubr.msk.bf16.vlgmr.msra.gmra.mxu0 %vm383_vm3, %v764_v33 }
 0x866   :  { %2423 = vmatprep.mubr.msk.bf16.mxu0 %vm2900_vm0, %v2899_v0  ;;  %2420 = vmatpush3.bf16.msra.mxu0 %v2559_v10 }
 0x867   :  { %2421 = vmatprep.subr.bf16.mxu0 %v2899_v0  ;;  %2410 = vmatpush3.bf16.msra.mxu1 %v2558_v11 }
 0x868   :  { %2411 = vmatprep.subr.bf16.mxu1 %v2899_v0 }
 0x86a   :  { %2422 = vmatpush3.bf16.msra.mxu0 %v2561_v12 }
 0x86b   :  { %2427 = vmatprep.subr.bf16.mxu0 %v2899_v0  ;;  %2412 = vmatpush3.bf16.msra.mxu1 %v2560_v14 }
 0x86c   :  { %2413 = vmatprep.subr.bf16.mxu1 %v2899_v0 }
 0x922   :  { %v933_v35 = vpop.f32.mrf.mxu1 }
 0x923   :  { %v939_v36 = vadd.f32 %v933_v35, %v209_v34 }
 0x924   :  { %v2405_v37 = vpop.f32.mrf.mxu1 }
 0x925   :  { %2631 = vtanh.f32 %v939_v36  ;;  %v840_v39 = vpop.f32.mrf.mxu0  ;;  %v2178_v46 = vmul.f32 -1.442695, %v939_v36 }
 0x926   :  { %v936_v40 = vpop.f32.mrf.mxu1  ;;  %v841_v41 = vadd.f32 %v3076_v53, %v840_v39 }
 0x927   :  { %v2397_v42 = vpop.f32.mrf.mxu0 }
 0x928   :  { %v2406_v43 = vpop.f32.mrf.mxu1  ;;  %2633 = vtanh.f32 %v841_v41  ;;  %v2173_v54 = vmul.f32 -1.442695, %v841_v41 }
 0x929   :  { %v843_v44 = vpop.f32.mrf.mxu0  ;;  %2635 = vpow2.f32 %v2178_v46 }
 0x92a   :  { %2637 = vpow2.f32 %v2173_v54 }
 0x92b   :  { %v2398_v45 = vpop.f32.mrf.mxu0 }
 0x932   :  { %v2632_v47 = vpop.eup %2631 }
 0x933   :  { %949 = vrot.lane.b32.xlu0 %v2632_v47, %s2892_s26 }
 0x935   :  { %v2634_v51 = vpop.eup %2633 }
 0x936   :  { %855 = vrot.lane.b32.xlu1 %v2634_v51, %s2892_s26  ;;  %v2636_v55 = vpop.eup %2635 }
 0x937   :  { %v943_v56 = vadd.f32 1.0, %v2636_v55  ;;  %v2638_v57 = vpop.eup %2637 }
 0x938   :  { %v849_v58 = vadd.f32 1.0, %v2638_v57 }
 0x939   :  { %2639 = vrcp.f32 %v943_v56 }
 0x93a   :  { %2641 = vrcp.f32 %v849_v58 }
 0x946   :  { %v2640_v59 = vpop.eup %2639 }
 0x947   :  { %v2642_v61 = vpop.eup %2641  ;;  %v947_v1 = vmul.f32 %v2640_v59, %v3131_v13 }
 0x948   :  { %v853_v4 = vmul.f32 %v2642_v61, %v3135_v16  ;;  %v2562_v16 = vld [vmem:[%s3461_s4] sm:$0xff]  }
 0x949   :  { %2414 = vmatpush3.bf16.msra.mxu1 %v2562_v16 }
 0x94a   :  { %2439 = vmatprep.subr.bf16.mxu1 %v2899_v0 }
 0x9a5   :  { %v950_v60 = vpop.permute.xlu0 %949 }
 0x9a6   :  { %v952_v8 = vmul.f32 %v2640_v59, %v950_v60 }
 0x9a8   :  { %954 = vrot.lane.b32.xlu0 %v952_v8, %s2901_s19  ;;  %v856_v62 = vpop.permute.xlu1 %855 }
 0x9a9   :  { %v858_v63 = vmul.f32 %v2642_v61, %v856_v62  ;;  %v2563_v62 = vld [vmem:[%s3461_s4 + $0x18] sm:$0xff]  }
 0x9ab   :  { %860 = vrot.lane.b32.xlu1 %v858_v63, %s2901_s19  ;;  %v2564_v63 = vld [vmem:[#allocation7 + $0x8] sm:$0xff]  }
 0xa1a   :  { %v955_v2 = vpop.permute.xlu0 %954 }
 0xa1b   :  { %v3178_v3 = vadd.f32 %v955_v2, %v947_v1  ;;  %v2565_v1 = vld [vmem:[%s3461_s4 + $0x10] sm:$0xff]   ;;  %v2566_v2 = vld [vmem:[#allocation7] sm:$0xff]  }
 0xa1d   :  { %2643 = vtanh.f32 %v3178_v3  ;;  %v861_v5 = vpop.permute.xlu1 %860 }
 0xa1e   :  { %v3182_v6 = vadd.f32 %v861_v5, %v853_v4  ;;  %v2567_v4 = vld [vmem:[%s3461_s4 + $0x8] sm:$0xff]  }
 0xa20   :  { %2645 = vtanh.f32 %v3182_v6 }
 0xa2a   :  { %v2644_v13 = vpop.eup %2643 }
 0xa2b   :  { %960 = vrot.lane.b32.xlu0 %v2644_v13, %s2892_s26 }
 0xa2d   :  { %v2646_v15 = vpop.eup %2645 }
 0xa2e   :  { %866 = vrot.lane.b32.xlu1 %v2646_v15, %s2892_s26 }
 0xa9d   :  { %v961_v17 = vpop.permute.xlu0 %960 }
 0xa9e   :  { %v963_v18 = vmul.f32 %v2640_v59, %v961_v17 }
 0xaa0   :  { %v964_v19 = vpack.c.bf16 %v963_v18, %v963_v18  ;;  %v867_v20 = vpop.permute.xlu1 %866  ;;  %v217_v18 = vadd.f32 %v3018_v9, %v3074_v52 }
 0xaa1   :  { %v869_v21 = vmul.f32 %v2642_v61, %v867_v20 }
 0xaa2   :  { %966 = vrot.lane.b32.xlu1 %v964_v19, %s2901_s19 }
 0xaa3   :  { %v3206_v22 = vpack.c.bf16 %v869_v21, %v869_v21 }
 0xaa5   :  { %968 = vrot.lane.b32.xlu0 %v3206_v22, %s2892_s26 }
 0xb14   :  { %v967_v23 = vpop.permute.xlu1 %966 }
 0xb15   :  { %2424 = vmatmul.mubr.msk.bf16.vlgmr.msra.gmra.mxu0 %vm261_vm2, %v967_v23 }
 0xb16   :  { %2435 = vmatprep.mubr.msk.bf16.mxu0 %vm2900_vm0, %v2899_v0  ;;  %2428 = vmatpush3.bf16.msra.mxu0 %v2563_v62 }
 0xb17   :  { %v969_v24 = vpop.permute.xlu0 %968  ;;  %2429 = vmatprep.subr.bf16.mxu0 %v2899_v0 }
 0xb18   :  { %v972_v25 = vsel %vm261_vm2, %v967_v23, %v969_v24 }
 0xb19   :  { %2416 = vmatmul.mubr.msk.bf16.vlgmr.msra.gmra.mxu1 %vm383_vm3, %v972_v25 }
 0xb1a   :  { %2443 = vmatprep.mubr.msk.bf16.mxu1 %vm2900_vm0, %v2899_v0  ;;  %2440 = vmatpush3.bf16.msra.mxu1 %v2564_v63 }
 0xb1b   :  { %2441 = vmatprep.subr.bf16.mxu1 %v2899_v0  ;;  %2430 = vmatpush3.bf16.msra.mxu0 %v2565_v1 }
 0xb1c   :  { %2431 = vmatprep.subr.bf16.mxu0 %v2899_v0 }
 0xb1e   :  { %2442 = vmatpush3.bf16.msra.mxu1 %v2566_v2 }
 0xb1f   :  { %2447 = vmatprep.subr.bf16.mxu1 %v2899_v0  ;;  %2432 = vmatpush3.bf16.msra.mxu0 %v2567_v4 }
 0xb20   :  { %2433 = vmatprep.subr.bf16.mxu0 %v2899_v0 }
 0xbd5   :  { %v1141_v27 = vpop.f32.mrf.mxu0 }
 0xbd6   :  { %v1147_v28 = vadd.f32 %v1141_v27, %v214_v26 }
 0xbd7   :  { %v2425_v29 = vpop.f32.mrf.mxu0 }
 0xbd8   :  { %2647 = vtanh.f32 %v1147_v28  ;;  %v2190_v49 = vmul.f32 -1.442695, %v1147_v28 }
 0xbd9   :  { %v1144_v31 = vpop.f32.mrf.mxu0  ;;  %v1048_v32 = vpop.f32.mrf.mxu1 }
 0xbda   :  { %v1049_v33 = vadd.f32 %v3076_v53, %v1048_v32 }
 0xbdb   :  { %v2426_v34 = vpop.f32.mrf.mxu0  ;;  %v2417_v35 = vpop.f32.mrf.mxu1 }
 0xbdc   :  { %2649 = vtanh.f32 %v1049_v33  ;;  %v2185_v41 = vmul.f32 -1.442695, %v1049_v33 }
 0xbdd   :  { %v1051_v36 = vpop.f32.mrf.mxu1  ;;  %2651 = vpow2.f32 %v2190_v49 }
 0xbde   :  { %2653 = vpow2.f32 %v2185_v41 }
 0xbdf   :  { %v2418_v37 = vpop.f32.mrf.mxu1 }
 0xbe5   :  { %v2648_v39 = vpop.eup %2647 }
 0xbe6   :  { %1157 = vrot.lane.b32.xlu0 %v2648_v39, %s2892_s26 }
 0xbe9   :  { %v2650_v40 = vpop.eup %2649 }
 0xbea   :  { %1063 = vrot.lane.b32.xlu1 %v2650_v40, %s2892_s26  ;;  %v2652_v42 = vpop.eup %2651 }
 0xbeb   :  { %v1151_v43 = vadd.f32 1.0, %v2652_v42  ;;  %v2654_v44 = vpop.eup %2653 }
 0xbec   :  { %v1057_v45 = vadd.f32 1.0, %v2654_v44 }
 0xbed   :  { %2655 = vrcp.f32 %v1151_v43 }
 0xbee   :  { %2657 = vrcp.f32 %v1057_v45 }
 0xbfa   :  { %v2656_v47 = vpop.eup %2655 }
 0xbfb   :  { %v2658_v54 = vpop.eup %2657  ;;  %v1155_v57 = vmul.f32 %v2656_v47, %v3178_v3 }
 0xbfc   :  { %v1061_v60 = vmul.f32 %v2658_v54, %v3182_v6  ;;  %v2568_v6 = vld [vmem:[%s3461_s4] sm:$0xff]  }
 0xbfd   :  { %2434 = vmatpush3.bf16.msra.mxu0 %v2568_v6 }
 0xbfe   :  { %2459 = vmatprep.subr.bf16.mxu0 %v2899_v0 }
 0xc58   :  { %v1158_v51 = vpop.permute.xlu0 %1157 }
 0xc59   :  { %v1160_v46 = vmul.f32 %v2656_v47, %v1158_v51 }
 0xc5b   :  { %1162 = vrot.lane.b32.xlu0 %v1160_v46, %s2901_s19 }
 0xc5c   :  { %v1064_v55 = vpop.permute.xlu1 %1063 }
 0xc5d   :  { %v1066_v56 = vmul.f32 %v2658_v54, %v1064_v55  ;;  %v2569_v55 = vld [vmem:[%s3461_s4 + $0x18] sm:$0xff]  }
 0xc5f   :  { %1068 = vrot.lane.b32.xlu1 %v1066_v56, %s2901_s19  ;;  %v2570_v56 = vld [vmem:[#allocation7 + $0x8] sm:$0xff]  }
 0xccd   :  { %v1163_v58 = vpop.permute.xlu0 %1162 }
 0xcce   :  { %v3225_v59 = vadd.f32 %v1163_v58, %v1155_v57  ;;  %v2571_v58 = vld [vmem:[%s3461_s4 + $0x10] sm:$0xff]  }
 0xcd0   :  { %2659 = vtanh.f32 %v3225_v59 }
 0xcd1   :  { %v1069_v8 = vpop.permute.xlu1 %1068 }
 0xcd2   :  { %v3229_v61 = vadd.f32 %v1069_v8, %v1061_v60  ;;  %v2573_v60 = vld [vmem:[%s3461_s4 + $0x8] sm:$0xff]  }
 0xcd4   :  { %2661 = vtanh.f32 %v3229_v61 }
 0xcdd   :  { %v2660_v3 = vpop.eup %2659 }
 0xcde   :  { %1168 = vrot.lane.b32.xlu0 %v2660_v3, %s2892_s26 }
 0xce1   :  { %v2662_v5 = vpop.eup %2661 }
 0xce2   :  { %1074 = vrot.lane.b32.xlu1 %v2662_v5, %s2892_s26 }
 0xd50   :  { %v1169_v7 = vpop.permute.xlu0 %1168 }
 0xd51   :  { %v1171_v10 = vmul.f32 %v2656_v47, %v1169_v7 }
 0xd53   :  { %v1172_v11 = vpack.c.bf16 %v1171_v10, %v1171_v10  ;;  %v222_v10 = vadd.f32 %v3067_v48, %v3018_v9 }
 0xd54   :  { %v1075_v12 = vpop.permute.xlu1 %1074 }
 0xd55   :  { %1174 = vrot.lane.b32.xlu1 %v1172_v11, %s2901_s19  ;;  %v1077_v13 = vmul.f32 %v2658_v54, %v1075_v12 }
 0xd57   :  { %v3253_v14 = vpack.c.bf16 %v1077_v13, %v1077_v13 }
 0xd59   :  { %1176 = vrot.lane.b32.xlu0 %v3253_v14, %s2892_s26 }
 0xdc7   :  { %v1175_v15 = vpop.permute.xlu1 %1174 }
 0xdc8   :  { %2444 = vmatmul.mubr.msk.bf16.vlgmr.msra.gmra.mxu1 %vm261_vm2, %v1175_v15 }
 0xdc9   :  { %2455 = vmatprep.mubr.msk.bf16.mxu1 %vm2900_vm0, %v2899_v0  ;;  %2448 = vmatpush3.bf16.msra.mxu1 %v2569_v55 }
 0xdca   :  { %2449 = vmatprep.subr.bf16.mxu1 %v2899_v0 }
 0xdcb   :  { %v1177_v16 = vpop.permute.xlu0 %1176 }
 0xdcc   :  { %v1180_v17 = vsel %vm261_vm2, %v1175_v15, %v1177_v16 }
 0xdcd   :  { %2436 = vmatmul.mubr.msk.bf16.vlgmr.msra.gmra.mxu0 %vm383_vm3, %v1180_v17  ;;  %2450 = vmatpush3.bf16.msra.mxu1 %v2571_v58 }
 0xdce   :  { %2463 = vmatprep.mubr.msk.bf16.mxu0 %vm2900_vm0, %v2899_v0  ;;  %2460 = vmatpush3.bf16.msra.mxu0 %v2570_v56 }
 0xdcf   :  { %2461 = vmatprep.subr.bf16.mxu0 %v2899_v0  ;;  %2451 = vmatprep.subr.bf16.mxu1 %v2899_v0 }
 0xdd1   :  { %2452 = vmatpush3.bf16.msra.mxu1 %v2573_v60 }
 0xdd2   :  { %2453 = vmatprep.subr.bf16.mxu1 %v2899_v0 }
 0xe88   :  { %v1349_v19 = vpop.f32.mrf.mxu1 }
 0xe89   :  { %v1355_v20 = vadd.f32 %v1349_v19, %v217_v18 }
 0xe8a   :  { %v2445_v21 = vpop.f32.mrf.mxu1 }
 0xe8b   :  { %2663 = vtanh.f32 %v1355_v20  ;;  %v2202_v52 = vmul.f32 -1.442695, %v1355_v20 }
 0xe8c   :  { %v1352_v23 = vpop.f32.mrf.mxu1 }
 0xe8d   :  { %v1256_v24 = vpop.f32.mrf.mxu0 }
 0xe8e   :  { %v2446_v25 = vpop.f32.mrf.mxu1  ;;  %v1257_v26 = vadd.f32 %v3076_v53, %v1256_v24 }
 0xe8f   :  { %v2437_v27 = vpop.f32.mrf.mxu0 }
 0xe90   :  { %2665 = vtanh.f32 %v1257_v26  ;;  %v2197_v33 = vmul.f32 -1.442695, %v1257_v26 }
 0xe91   :  { %v1259_v28 = vpop.f32.mrf.mxu0  ;;  %2667 = vpow2.f32 %v2202_v52 }
 0xe92   :  { %2669 = vpow2.f32 %v2197_v33 }
 0xe93   :  { %v2438_v29 = vpop.f32.mrf.mxu0 }
 0xe98   :  { %v2664_v31 = vpop.eup %2663 }
 0xe99   :  { %1365 = vrot.lane.b32.xlu0 %v2664_v31, %s2892_s26 }
 0xe9d   :  { %v2666_v32 = vpop.eup %2665 }
 0xe9e   :  { %1271 = vrot.lane.b32.xlu1 %v2666_v32, %s2892_s26  ;;  %v2668_v34 = vpop.eup %2667 }
 0xe9f   :  { %v1359_v35 = vadd.f32 1.0, %v2668_v34  ;;  %v2670_v36 = vpop.eup %2669 }
 0xea0   :  { %v1265_v37 = vadd.f32 1.0, %v2670_v36 }
 0xea1   :  { %2671 = vrcp.f32 %v1359_v35 }
 0xea2   :  { %2673 = vrcp.f32 %v1265_v37 }
 0xeae   :  { %v2672_v39 = vpop.eup %2671 }
 0xeaf   :  { %v2674_v41 = vpop.eup %2673  ;;  %v1363_v44 = vmul.f32 %v2672_v39, %v3225_v59  ;;  %v2572_v59 = vld [vmem:[#allocation7] sm:$0xff]  }
 0xeb0   :  { %v1269_v51 = vmul.f32 %v2674_v41, %v3229_v61  ;;  %2462 = vmatpush3.bf16.msra.mxu0 %v2572_v59  ;;  %v2574_v61 = vld [vmem:[%s3461_s4] sm:$0xff]  }
 0xeb1   :  { %2467 = vmatprep.subr.bf16.mxu0 %v2899_v0  ;;  %2454 = vmatpush3.bf16.msra.mxu1 %v2574_v61 }
 0xeb2   :  { %2479 = vmatprep.subr.bf16.mxu1 %v2899_v0 }
 0xf0b   :  { %v1366_v40 = vpop.permute.xlu0 %1365 }
 0xf0c   :  { %v1368_v49 = vmul.f32 %v2672_v39, %v1366_v40 }
 0xf0e   :  { %1370 = vrot.lane.b32.xlu0 %v1368_v49, %s2901_s19 }
 0xf10   :  { %v1272_v42 = vpop.permute.xlu1 %1271 }
 0xf11   :  { %v1274_v43 = vmul.f32 %v2674_v41, %v1272_v42  ;;  %v2576_v42 = vld [vmem:[#allocation7 + $0x8] sm:$0xff]  }
 0xf13   :  { %1276 = vrot.lane.b32.xlu1 %v1274_v43, %s2901_s19 }
 0xf80   :  { %v1371_v45 = vpop.permute.xlu0 %1370 }
 0xf81   :  { %v3272_v47 = vadd.f32 %v1371_v45, %v1363_v44  ;;  %v2577_v44 = vld [vmem:[%s3461_s4 + $0x10] sm:$0xff]   ;;  %v2578_v45 = vld [vmem:[#allocation7] sm:$0xff]  }
 0xf83   :  { %2675 = vtanh.f32 %v3272_v47 }
 0xf85   :  { %v1277_v46 = vpop.permute.xlu1 %1276 }
 0xf86   :  { %v3276_v54 = vadd.f32 %v1277_v46, %v1269_v51  ;;  %v2579_v51 = vld [vmem:[%s3461_s4 + $0x8] sm:$0xff]   ;;  %v2580_v46 = vld [vmem:[%s3461_s4] sm:$0xff]  }
 0xf88   :  { %2677 = vtanh.f32 %v3276_v54 }
 0xf90   :  { %v2676_v57 = vpop.eup %2675 }
 0xf91   :  { %1376 = vrot.lane.b32.xlu0 %v2676_v57, %s2892_s26 }
 0xf95   :  { %v2678_v8 = vpop.eup %2677 }
 0xf96   :  { %1282 = vrot.lane.b32.xlu1 %v2678_v8, %s2892_s26 }
0x1003   :  { %v1377_v62 = vpop.permute.xlu0 %1376 }
0x1004   :  { %v1379_v63 = vmul.f32 %v2672_v39, %v1377_v62  ;;  %v2719_v62 = vld [vmem:[%s3460_s3] ss:$0 sm:$0xff] }
0x1006   :  { %v1380_v1 = vpack.c.bf16 %v1379_v63, %v1379_v63  ;;  %v225_v63 = vadd.f32 %v2719_v62, %v3071_v50 }
0x1008   :  { %1382 = vrot.lane.b32.xlu1 %v1380_v1, %s2901_s19  ;;  %v1283_v2 = vpop.permute.xlu1 %1282 }
0x1009   :  { %v1285_v3 = vmul.f32 %v2674_v41, %v1283_v2  ;;  %v2575_v41 = vld [vmem:[%s3461_s4 + $0x18] sm:$0xff]  }
0x100b   :  { %v3300_v4 = vpack.c.bf16 %v1285_v3, %v1285_v3 }
0x100d   :  { %1384 = vrot.lane.b32.xlu0 %v3300_v4, %s2892_s26 }
0x107a   :  { %v1383_v5 = vpop.permute.xlu1 %1382 }
0x107b   :  { %2464 = vmatmul.mubr.msk.bf16.vlgmr.msra.gmra.mxu0 %vm261_vm2, %v1383_v5 }
0x107c   :  { %2475 = vmatprep.mubr.msk.bf16.mxu0 %vm2900_vm0, %v2899_v0  ;;  %2468 = vmatpush3.bf16.msra.mxu0 %v2575_v41 }
0x107d   :  { %2469 = vmatprep.subr.bf16.mxu0 %v2899_v0 }
0x107f   :  { %v1385_v6 = vpop.permute.xlu0 %1384 }
0x1080   :  { %v1388_v7 = vsel %vm261_vm2, %v1383_v5, %v1385_v6  ;;  %2470 = vmatpush3.bf16.msra.mxu0 %v2577_v44 }
0x1081   :  { %2456 = vmatmul.mubr.msk.bf16.vlgmr.msra.gmra.mxu1 %vm383_vm3, %v1388_v7  ;;  %2471 = vmatprep.subr.bf16.mxu0 %v2899_v0 }
0x1082   :  { %2483 = vmatprep.mubr.msk.bf16.mxu1 %vm2900_vm0, %v2899_v0  ;;  %2480 = vmatpush3.bf16.msra.mxu1 %v2576_v42 }
0x1083   :  { %2481 = vmatprep.subr.bf16.mxu1 %v2899_v0 }
0x1084   :  { %2472 = vmatpush3.bf16.msra.mxu0 %v2579_v51 }
0x1085   :  { %2473 = vmatprep.subr.bf16.mxu0 %v2899_v0 }
0x1086   :  { %2482 = vmatpush3.bf16.msra.mxu1 %v2578_v45 }
0x1087   :  { %2487 = vmatprep.subr.bf16.mxu1 %v2899_v0 }
0x1088   :  { %2474 = vmatpush3.bf16.msra.mxu0 %v2580_v46 }
0x113b   :  { %v1557_v11 = vpop.f32.mrf.mxu0 }
0x113c   :  { %v1563_v12 = vadd.f32 %v1557_v11, %v222_v10 }
0x113d   :  { %v2465_v13 = vpop.f32.mrf.mxu0 }
0x113e   :  { %2679 = vtanh.f32 %v1563_v12  ;;  %v2214_v9 = vmul.f32 -1.442695, %v1563_v12 }
0x113f   :  { %v1560_v15 = vpop.f32.mrf.mxu0 }
0x1141   :  { %v2466_v16 = vpop.f32.mrf.mxu0  ;;  %v1464_v17 = vpop.f32.mrf.mxu1 }
0x1142   :  { %v1465_v18 = vadd.f32 %v3076_v53, %v1464_v17 }
0x1143   :  { %v2457_v19 = vpop.f32.mrf.mxu1 }
0x1144   :  { %2681 = vtanh.f32 %v1465_v18  ;;  %v2209_v48 = vmul.f32 -1.442695, %v1465_v18 }
0x1145   :  { %v1467_v20 = vpop.f32.mrf.mxu1  ;;  %2683 = vpow2.f32 %v2214_v9 }
0x1146   :  { %2685 = vpow2.f32 %v2209_v48 }
0x1147   :  { %v2458_v21 = vpop.f32.mrf.mxu1 }
0x114b   :  { %v2680_v23 = vpop.eup %2679 }
0x114c   :  { %1573 = vrot.lane.b32.xlu0 %v2680_v23, %s2892_s26 }
0x1151   :  { %v2682_v24 = vpop.eup %2681 }
0x1152   :  { %1479 = vrot.lane.b32.xlu1 %v2682_v24, %s2892_s26  ;;  %v2684_v25 = vpop.eup %2683 }
0x1153   :  { %v1567_v26 = vadd.f32 1.0, %v2684_v25  ;;  %v2686_v27 = vpop.eup %2685 }
0x1154   :  { %v1473_v28 = vadd.f32 1.0, %v2686_v27 }
0x1155   :  { %2687 = vrcp.f32 %v1567_v26 }
0x1156   :  { %2689 = vrcp.f32 %v1473_v28 }
0x1162   :  { %v2688_v29 = vpop.eup %2687 }
0x1163   :  { %v2690_v52 = vpop.eup %2689  ;;  %v1571_v35 = vmul.f32 %v2688_v29, %v3272_v47 }
0x1164   :  { %v1477_v39 = vmul.f32 %v2690_v52, %v3276_v54 }
0x11be   :  { %v1574_v31 = vpop.permute.xlu0 %1573 }
0x11bf   :  { %v1576_v32 = vmul.f32 %v2688_v29, %v1574_v31 }
0x11c1   :  { %1578 = vrot.lane.b32.xlu0 %v1576_v32, %s2901_s19 }
0x11c4   :  { %v1480_v33 = vpop.permute.xlu1 %1479 }
0x11c5   :  { %v1482_v34 = vmul.f32 %v2690_v52, %v1480_v33  ;;  %v2581_v33 = vld [vmem:[%s3461_s4 + $0x18] sm:$0xff]  }
0x11c7   :  { %1484 = vrot.lane.b32.xlu1 %v1482_v34, %s2901_s19  ;;  %v2582_v34 = vld [vmem:[%s3461_s4 + $0x10] sm:$0xff]  }
0x1233   :  { %v1579_v36 = vpop.permute.xlu0 %1578 }
0x1234   :  { %v3319_v37 = vadd.f32 %v1579_v36, %v1571_v35  ;;  %v2583_v36 = vld [vmem:[%s3461_s4 + $0x8] sm:$0xff]  }
0x1236   :  { %2691 = vtanh.f32 %v3319_v37 }
0x1239   :  { %v1485_v40 = vpop.permute.xlu1 %1484 }
0x123a   :  { %v3323_v49 = vadd.f32 %v1485_v40, %v1477_v39 }
0x123c   :  { %2693 = vtanh.f32 %v3323_v49 }
0x1243   :  { %v2692_v43 = vpop.eup %2691 }
0x1244   :  { %1584 = vrot.lane.b32.xlu0 %v2692_v43, %s2892_s26 }
0x1249   :  { %v2694_v47 = vpop.eup %2693 }
0x124a   :  { %1490 = vrot.lane.b32.xlu1 %v2694_v47, %s2892_s26 }
0x12b6   :  { %v1585_v54 = vpop.permute.xlu0 %1584 }
0x12b7   :  { %v1587_v55 = vmul.f32 %v2688_v29, %v1585_v54 }
0x12b9   :  { %v1588_v56 = vpack.c.bf16 %v1587_v55, %v1587_v55 }
0x12bb   :  { %1590 = vrot.lane.b32.xlu1 %v1588_v56, %s2901_s19 }
0x12bc   :  { %v1491_v57 = vpop.permute.xlu1 %1490 }
0x12bd   :  { %v1493_v58 = vmul.f32 %v2690_v52, %v1491_v57 }
0x12bf   :  { %v3346_v59 = vpack.c.bf16 %v1493_v58, %v1493_v58 }
0x12c1   :  { %1592 = vrot.lane.b32.xlu0 %v3346_v59, %s2892_s26 }
0x132d   :  { %v1591_v60 = vpop.permute.xlu1 %1590 }
0x132e   :  { %2484 = vmatmul.mubr.msk.bf16.vlgmr.msra.gmra.mxu1 %vm261_vm2, %v1591_v60 }
0x132f   :  { %2495 = vmatprep.mubr.msk.bf16.mxu1 %vm2900_vm0, %v2899_v0  ;;  %2488 = vmatpush3.bf16.msra.mxu1 %v2581_v33 }
0x1330   :  { %2489 = vmatprep.subr.bf16.mxu1 %v2899_v0 }
0x1333   :  { %v1593_v8 = vpop.permute.xlu0 %1592  ;;  %2490 = vmatpush3.bf16.msra.mxu1 %v2582_v34 }
0x1334   :  { %v1596_v61 = vsel %vm261_vm2, %v1591_v60, %v1593_v8  ;;  %2491 = vmatprep.subr.bf16.mxu1 %v2899_v0 }
0x1335   :  { %2476 = vmatmul.mubr.msk.bf16.vlgmr.msra.gmra.mxu0 %vm383_vm3, %v1596_v61 }
0x1337   :  { %2492 = vmatpush3.bf16.msra.mxu1 %v2583_v36 }
0x1338   :  { %2493 = vmatprep.subr.bf16.mxu1 %v2899_v0  ;;  %v2227_v0 = vld [vmem:[#allocation9] ss:$0 sm:$0xff] }
0x13ee   :  { %v1765_v1 = vpop.f32.mrf.mxu1 }
0x13ef   :  { %v1771_v2 = vadd.f32 %v1765_v1, %v225_v63 }
0x13f0   :  { %v2485_v3 = vpop.f32.mrf.mxu1 }
0x13f1   :  { %2695 = vtanh.f32 %v1771_v2  ;;  %v2226_v50 = vmul.f32 -1.442695, %v1771_v2 }
0x13f2   :  { %v1768_v5 = vpop.f32.mrf.mxu1 }
0x13f4   :  { %v2486_v6 = vpop.f32.mrf.mxu1 }
0x13f5   :  { %v1672_v7 = vpop.f32.mrf.mxu0 }
0x13f6   :  { %v1673_v10 = vadd.f32 %v3076_v53, %v1672_v7 }
0x13f7   :  { %v2477_v11 = vpop.f32.mrf.mxu0 }
0x13f8   :  { %2697 = vtanh.f32 %v1673_v10  ;;  %v2221_v17 = vmul.f32 -1.442695, %v1673_v10 }
0x13f9   :  { %v1675_v12 = vpop.f32.mrf.mxu0  ;;  %2699 = vpow2.f32 %v2226_v50 }
0x13fa   :  { %2701 = vpow2.f32 %v2221_v17 }
0x13fb   :  { %v2478_v13 = vpop.f32.mrf.mxu0 }
0x13fe   :  { %v2696_v15 = vpop.eup %2695 }
0x13ff   :  { %1781 = vrot.lane.b32.xlu0 %v2696_v15, %s2892_s26 }
0x1405   :  { %v2698_v16 = vpop.eup %2697 }
0x1406   :  { %1687 = vrot.lane.b32.xlu1 %v2698_v16, %s2892_s26  ;;  %v2700_v18 = vpop.eup %2699 }
0x1407   :  { %v1775_v19 = vadd.f32 1.0, %v2700_v18  ;;  %v2702_v20 = vpop.eup %2701 }
0x1408   :  { %v1681_v21 = vadd.f32 1.0, %v2702_v20 }
0x1409   :  { %2703 = vrcp.f32 %v1775_v19 }
0x140a   :  { %2705 = vrcp.f32 %v1681_v21 }
0x1416   :  { %v2704_v53 = vpop.eup %2703 }
0x1417   :  { %v2706_v9 = vpop.eup %2705  ;;  %v1779_v26 = vmul.f32 %v2704_v53, %v3319_v37  ;;  %v2584_v37 = vld [vmem:[%s3461_s4] sm:$0xff]  }
0x1418   :  { %v1685_v29 = vmul.f32 %v2706_v9, %v3323_v49  ;;  %2494 = vmatpush3.bf16.msra.mxu1 %v2584_v37 }
0x1471   :  { %v1782_v23 = vpop.permute.xlu0 %1781 }
0x1472   :  { %v1784_v24 = vmul.f32 %v2704_v53, %v1782_v23 }
0x1474   :  { %1786 = vrot.lane.b32.xlu0 %v1784_v24, %s2901_s19 }
0x1478   :  { %v1688_v48 = vpop.permute.xlu1 %1687 }
0x1479   :  { %v1690_v25 = vmul.f32 %v2706_v9, %v1688_v48 }
0x147b   :  { %1692 = vrot.lane.b32.xlu1 %v1690_v25, %s2901_s19 }
0x14e6   :  { %v1787_v27 = vpop.permute.xlu0 %1786 }
0x14e7   :  { %v3365_v28 = vadd.f32 %v1787_v27, %v1779_v26 }
0x14e9   :  { %2707 = vtanh.f32 %v3365_v28 }
0x14ed   :  { %v1693_v31 = vpop.permute.xlu1 %1692 }
0x14ee   :  { %v1695_v32 = vadd.f32 %v1693_v31, %v1685_v29 }
0x14f0   :  { %2709 = vtanh.f32 %v1695_v32 }
0x14f6   :  { %v2708_v52 = vpop.eup %2707 }
0x14f7   :  { %1792 = vrot.lane.b32.xlu0 %v2708_v52, %s2892_s26 }
0x14fd   :  { %v2710_v35 = vpop.eup %2709 }
0x14fe   :  { %1698 = vrot.lane.b32.xlu1 %v2710_v35, %s2892_s26 }
0x1569   :  { %v1793_v39 = vpop.permute.xlu0 %1792 }
0x156a   :  { %v3386_v40 = vmul.f32 %v2704_v53, %v1793_v39 }
0x156c   :  { %v1796_v49 = vpack.c.bf16 %v3386_v40, %v3386_v40 }
0x156e   :  { %1798 = vrot.lane.b32.xlu1 %v1796_v49, %s2901_s19 }
0x1570   :  { %v1699_v41 = vpop.permute.xlu1 %1698 }
0x1571   :  { %v1701_v42 = vmul.f32 %v2706_v9, %v1699_v41 }
0x1573   :  { %v1702_v43 = vpack.c.bf16 %v1701_v42, %v1701_v42 }
0x1575   :  { %1800 = vrot.lane.b32.xlu0 %v1702_v43, %s2892_s26 }
0x15e0   :  { %v1799_v44 = vpop.permute.xlu1 %1798 }
0x15e7   :  { %v1801_v45 = vpop.permute.xlu0 %1800 }
0x15e8   :  { %v1804_v47 = vsel %vm261_vm2, %v1799_v44, %v1801_v45 }
0x15e9   :  { %2496 = vmatmul.mubr.msk.bf16.vlgmr.msra.gmra.mxu1 %vm383_vm3, %v1804_v47 }
0x16a9   :  { %v1880_v51 = vpop.f32.mrf.mxu1 }
0x16aa   :  { %v1881_v46 = vadd.f32 %v2227_v0, %v1880_v51 }
0x16ab   :  { %v2497_v54 = vpop.f32.mrf.mxu1 }
0x16ac   :  { %2711 = vtanh.f32 %v1881_v46  ;;  %v2233_v58 = vmul.f32 -1.442695, %v1881_v46 }
0x16ad   :  { %v1883_v55 = vpop.f32.mrf.mxu1 }
0x16ae   :  { %2713 = vpow2.f32 %v2233_v58 }
0x16af   :  { %v2498_v56 = vpop.f32.mrf.mxu1 }
0x16b9   :  { %v2712_v57 = vpop.eup %2711 }
0x16ba   :  { %1895 = vrot.lane.b32.xlu1 %v2712_v57, %s2892_s26 }
0x16bb   :  { %v2714_v60 = vpop.eup %2713 }
0x16bc   :  { %v1889_v8 = vadd.f32 1.0, %v2714_v60 }
0x16be   :  { %2715 = vrcp.f32 %v1889_v8 }
0x16cb   :  { %v2716_v61 = vpop.eup %2715 }
0x16cc   :  { %v1893_v1 = vmul.f32 %v2716_v61, %v1695_v32 }
0x172c   :  { %v1896_v62 = vpop.permute.xlu1 %1895 }
0x172d   :  { %v1898_v63 = vmul.f32 %v2716_v61, %v1896_v62 }
0x172f   :  { %1900 = vrot.lane.b32.xlu0 %v1898_v63, %s2901_s19 }
0x1733   :  { %458 = vrot.lane.b32.xlu0 %v3111_v38, %s2901_s19  ;;  %v2585_v38 = vld [vmem:[%s3463_s6 + $0x8] sm:$0xff]  }
0x1734   :  { %2499 = vmatprep.subr.bf16.mxu0 %v2585_v38 }
0x1735   :  { %2500 = vmatpush3.bf16.msra.mxu0 %v2585_v38 }
0x1737   :  { %874 = vrot.lane.b32.xlu0 %v3206_v22, %s2901_s19 }
0x173b   :  { %1290 = vrot.lane.b32.xlu0 %v3300_v4, %s2901_s19  ;;  %v2586_v4 = vld [vmem:[%s3463_s6] sm:$0xff]   ;;  %s2902_s6 = smov 96  }
0x173c   :  { %2501 = vmatprep.subr.bf16.mxu0 %v2586_v4 }
0x173d   :  { %2502 = vmatpush3.bf16.msra.mxu0 %v2586_v4 }
0x173f   :  { %1706 = vrot.lane.b32.xlu0 %v1702_v43, %s2901_s19 }
0x17a1   :  { %v1901_v2 = vpop.permute.xlu0 %1900 }
0x17a2   :  { %v1903_v3 = vadd.f32 %v1901_v2, %v1893_v1 }
0x17a4   :  { %2717 = vtanh.f32 %v1903_v3 }
0x17a5   :  { %v459_v5 = vpop.permute.xlu0 %458 }
0x17a6   :  { %462 = vst.msk [vmem:[#allocation3] sm:$0xf] %vm461_vm4, %v459_v5 }
0x17a9   :  { %v875_v6 = vpop.permute.xlu0 %874 }
0x17aa   :  { %878 = vst.msk [vmem:[#allocation3 + $0x8] sm:$0xf] %vm461_vm4, %v875_v6 }
0x17ad   :  { %v1291_v22 = vpop.permute.xlu0 %1290 }
0x17ae   :  { %1294 = vst.msk [vmem:[#allocation3 + $0x10] sm:$0xf] %vm461_vm4, %v1291_v22 }
0x17b1   :  { %v2718_v7 = vpop.eup %2717  ;;  %v1707_v10 = vpop.permute.xlu0 %1706 }
0x17b2   :  { %1710 = vst.msk [vmem:[#allocation3 + $0x18] sm:$0xf] %vm461_vm4, %v1707_v10  ;;  %1906 = vrot.lane.b32.xlu1 %v2718_v7, %s2892_s26  ;;  %s2903_s26 = smov [#allocation14]  }
0x17b6   :  { %666 = vrot.lane.b32.xlu1 %v3159_v30, %s2901_s19 }
0x17ba   :  { %1082 = vrot.lane.b32.xlu1 %v3253_v14, %s2901_s19 }
0x17be   :  { %1498 = vrot.lane.b32.xlu1 %v3346_v59, %s2901_s19 }
0x1824   :  { %v1907_v11 = vpop.permute.xlu1 %1906 }
0x1825   :  { %v1909_v12 = vmul.f32 %v2716_v61, %v1907_v11 }
0x1827   :  { %v1910_v13 = vpack.c.bf16 %v1909_v12, %v1909_v12  ;;  %v2527_v16 = vpack.i.bf16 %v1909_v12, %v3386_v40 }
0x1828   :  { %v667_v15 = vpop.permute.xlu1 %666 }
0x1829   :  { %670 = vst.msk [vmem:[#allocation3 + $0x4] sm:$0xf] %vm461_vm4, %v667_v15  ;;  %1914 = vrot.lane.b32.xlu1 %v1910_v13, %s2901_s19  ;;  %2528 = vrot.lane.b32.xlu0 %v2527_v16, %s2901_s19  ;;  %s2096_s19 = sshll.u32 %s2903_s26, 4  ;;  %s2097_s19 = int_to_ptr.vmem [resolvable:$true] %s2096_s19 }
0x182a   :  { %s2820_s1 = scalar_lea.vmem %s2097_s19, 256  ;;  %p2825_p12 = scmp.lt.s32.totalorder %s2097_s19, %s2097_s19 }
0x182b   :  { %p2821_p11 = scmp.ne.s32.totalorder %s2097_s19, %s2820_s1  ;;  %p2826_p13 = scmp.lt.s32.totalorder %s2820_s1, %s2820_s1 }
0x182c   :  { %v1083_v50 = vpop.permute.xlu1 %1082 }
0x182d   :  { %1086 = vst.msk [vmem:[#allocation3 + $0xc] sm:$0xf] %vm461_vm4, %v1083_v50  ;;  %1933 = vrot.lane.b32.xlu1 %v3365_v28, %s2902_s6  ;;  %1938 = vrot.lane.b32.xlu0 %v1903_v3, %s2902_s6  ;;  %p2827_p0 = por %p2826_p13, %p2825_p12 }
0x182f   :  { %p2828_p1 = pnand %p2827_p0, %p2821_p11 }
0x1830   :  { %v1499_v30 = vpop.permute.xlu1 %1498  ;;  %v2587_v14 = vld [vmem:[#allocation3] sm:$0xff]  }
0x1831   :  { %1502 = vst.msk [vmem:[#allocation3 + $0x14] sm:$0xf] %vm461_vm4, %v1499_v30  ;;  %2503 = vmatprep.mubr.msk.bf16.mxu0 %vm261_vm2, %v2587_v14 }
0x1834   :  { %v2588_v59 = vld [vmem:[#allocation3 + $0x8] sm:$0xff]  }
0x1835   :  { %2504 = vmatmul.mubr.msk.bf16.vlgmr.msra.gmra.mxu0 %vm261_vm2, %v2588_v59 }
0x1838   :  { %v2589_v17 = vld [vmem:[#allocation3 + $0x10] sm:$0xff]  }
0x1839   :  { %2507 = vmatprep.mubr.msk.bf16.mxu0 %vm261_vm2, %v2589_v17 }
0x189b   :  { %v1915_v18 = vpop.permute.xlu1 %1914  ;;  %v2529_v19 = vpop.permute.xlu0 %2528 }
0x189c   :  { %1918 = vst.msk [vmem:[#allocation3 + $0x1c] sm:$0xf] %vm461_vm4, %v1915_v18  ;;  %v2531_v21 = vunpack.i.h.bf16 %v2529_v19  ;;  %v2530_v53 = vunpack.i.l.bf16 %v2529_v19 }
0x189e   :  { %1924 = vst.msk [vmem:[#allocation14] sm:$0xff] %vm261_vm2, %v2530_v53  ;;  %1931 = vst.msk [vmem:[#allocation14 + $0x8] sm:$0xff] %vm261_vm2, %v2531_v21 }
0x189f   :  { %v1934_v20 = vpop.permute.xlu1 %1933  ;;  %v1939_v23 = vpop.permute.xlu0 %1938 }
0x18a0   :  { %1936 = vst.msk [vmem:[#allocation16] sm:$0xff] %vm261_vm2, %v1934_v20  ;;  %1942 = vst.msk [vmem:[#allocation16 + $0x8] sm:$0xff] %vm261_vm2, %v1939_v23 }
0x18a3   :  { %v2590_v24 = vld [vmem:[#allocation3 + $0x18] sm:$0xff]  }
0x18a4   :  { %2508 = vmatmul.mubr.msk.bf16.gmra.mxu0 %vm261_vm2, %v2590_v24 }
0x18a5   :  { %2831 = shalt.err (!%p2828_p1)
}
0x18a6   :  { %2102 = dma.vmem_to_hbm [thread:$0]  %s2097_s19, 256, %s3468_s11, [#allocation15], %s2894_s13, %s2894_s13, %s2895_s14  }
0x18a7   :  { %s2904_s15 = smov [#allocation16]  }
0x18a8   :  { %s2108_s9 = sshll.u32 %s2904_s15, 4  ;;  %s2109_s9 = int_to_ptr.vmem [resolvable:$true] %s2108_s9 }
0x18a9   :  { %s2840_s16 = scalar_lea.vmem %s2109_s9, 256  ;;  %p2845_p3 = scmp.lt.s32.totalorder %s2109_s9, %s2109_s9 }
0x18aa   :  { %p2841_p2 = scmp.ne.s32.totalorder %s2109_s9, %s2840_s16  ;;  %p2846_p4 = scmp.lt.s32.totalorder %s2840_s16, %s2840_s16 }
0x18ac   :  { %p2847_p5 = por %p2846_p4, %p2845_p3 }
0x18ae   :  { %p2848_p6 = pnand %p2847_p5, %p2841_p2 }
0x18b0   :  { %2851 = shalt.err (!%p2848_p6)
}
0x18b1   :  { %2114 = dma.vmem_to_hbm [thread:$0]  %s2109_s9, 256, %s3469_s12, [#allocation15], %s2894_s13, %s2894_s13, %s2895_s14  }
0x18b2   :  { %v2235_v9 = vld [vmem:[%s3464_s7] ss:$0 sm:$0xff]  ;;  %s2905_s11 = smov [#allocation13]  }
0x18b3   :  { %s2084_s7 = sshll.u32 %s2905_s11, 4  ;;  %s2085_s7 = int_to_ptr.vmem [resolvable:$true] %s2084_s7 }
0x18b4   :  { %s2860_s12 = scalar_lea.vmem %s2085_s7, 1024  ;;  %p2865_p8 = scmp.lt.s32.totalorder %s2085_s7, %s2085_s7 }
0x18b5   :  { %p2861_p7 = scmp.ne.s32.totalorder %s2085_s7, %s2860_s12  ;;  %p2866_p9 = scmp.lt.s32.totalorder %s2860_s12, %s2860_s12 }
0x18b7   :  { %p2867_p10 = por %p2866_p9, %p2865_p8 }
0x18b9   :  { %p2868_p11 = pnand %p2867_p10, %p2861_p7 }
0x18f5   :  { %v2505_v48 = vpop.f32.mrf.mxu0 }
0x18f6   :  { %v2049_v25 = vadd.f32 %v2505_v48, %v2235_v9 }
0x18f7   :  { %v2040_v26 = vpop.f32.mrf.mxu0 }
0x18f8   :  { %2073 = vst [vmem:[#allocation13 + $0x10] sm:$0xff] %v2049_v25  ;;  %v2041_v27 = vadd.f32 %v2235_v9, %v2040_v26 }
0x18f9   :  { %v2506_v28 = vpop.f32.mrf.mxu0 }
0x18fa   :  { %2071 = vst [vmem:[#allocation13] sm:$0xff] %v2041_v27  ;;  %v2052_v29 = vadd.f32 %v2506_v28, %v2235_v9 }
0x18fb   :  { %v2043_v31 = vpop.f32.mrf.mxu0 }
0x18fc   :  { %2074 = vst [vmem:[#allocation13 + $0x18] sm:$0xff] %v2052_v29  ;;  %v2044_v32 = vadd.f32 %v2235_v9, %v2043_v31 }
0x18fe   :  { %2072 = vst [vmem:[#allocation13 + $0x8] sm:$0xff] %v2044_v32 }
0x1964   :  { %v2509_v52 = vpop.f32.mrf.mxu0 }
0x1965   :  { %v2065_v33 = vadd.f32 %v2509_v52, %v2235_v9 }
0x1966   :  { %v2056_v34 = vpop.f32.mrf.mxu0 }
0x1967   :  { %2077 = vst [vmem:[#allocation13 + $0x30] sm:$0xff] %v2065_v33  ;;  %v2057_v35 = vadd.f32 %v2235_v9, %v2056_v34 }
0x1968   :  { %v2510_v36 = vpop.f32.mrf.mxu0 }
0x1969   :  { %2075 = vst [vmem:[#allocation13 + $0x20] sm:$0xff] %v2057_v35  ;;  %v2068_v37 = vadd.f32 %v2510_v36, %v2235_v9 }
0x196a   :  { %v2059_v39 = vpop.f32.mrf.mxu0 }
0x196b   :  { %2078 = vst [vmem:[#allocation13 + $0x38] sm:$0xff] %v2068_v37  ;;  %v2060_v40 = vadd.f32 %v2235_v9, %v2059_v39 }
0x196d   :  { %2076 = vst [vmem:[#allocation13 + $0x28] sm:$0xff] %v2060_v40 }
0x196e   :  { %2871 = shalt.err (!%p2868_p11)
}
0x196f   :  { %2090 = dma.vmem_to_hbm [thread:$0]  %s2085_s7, 1024, %s3467_s10, [#allocation6], %s2894_s13, %s2894_s13, %s2895_s14  }
0x1970   :  { %2886 = dma.done.wait [#allocation6], 1024  }
0x1971   :  { %2887 = vsyncadd [#allocation6], 4294966272 }
0x1972   :  { %2888 = dma.done.wait [#allocation15], 512  }
0x1973   :  { %2889 = vsyncadd [#allocation15], 4294966784 }
0x1974   :  { %2124 = vsyncpa [#allocation5], 1 }
0x1975   :  { %2125 = vsyncpa [#allocation8], 1 }
0x1976   :  { %2126 = vsyncpa [#allocation11], 1 }
0x1977   :  { %2127 = vsyncpa [#allocation6], 1 }
0x1978   :  { %2128 = vsyncpa [#allocation15], 1 }

</bundles_post_ra>
